<compile_context>
chip_gen: v6e
topology: v6e:2x2x1
jax: 0.10.0
libtpu: 0.0.40
codegen_flags: <defaults>
</compile_context>

<pallas_src>
import jax
import jax.numpy as jnp
from jax.experimental import pallas as pl
from jax.experimental.pallas import tpu as pltpu


def _layernorm(z, gamma, beta, eps=1e-5):
    mu = jnp.mean(z, axis=-1, keepdims=True)
    var = jnp.mean((z - mu) ** 2, axis=-1, keepdims=True)
    return (z - mu) * jax.lax.rsqrt(var + eps) * gamma + beta


def _pick_batch_tile(b, t, target_rows=256, min_grid_steps=2):
    """Choose how many batch elements each grid step processes.

    Constraints: bb divides b and bb*t is a multiple of 8 (or spans the full row axis).
    Preferences: rows >= target_rows (large M for the MXU) while leaving at least
    min_grid_steps grid steps so the 'parallel' row axis can shard across the two
    TensorCores of a v7x chip (no-op on single-TC v5e/v6e).
    """
    cands = [bb for bb in range(1, b + 1)
             if b % bb == 0 and ((bb * t) % 8 == 0 or bb == b)]
    for bb in cands:                       # smallest tile that is big enough and splittable
        if bb * t >= target_rows and b // bb >= min_grid_steps:
            return bb
    for bb in reversed(cands):             # else: biggest tile that still leaves >=2 steps
        if b // bb >= min_grid_steps:
            return bb
    return cands[-1]                       # b too small to split: one full-batch step


def _vmem_limit_bytes(headroom=20 * 1024 * 1024, floor=32 * 1024 * 1024):
    """Scoped-VMEM budget derived from the actual part (v5e/v6e: 128 MiB, v7x: 64 MiB)."""
    try:
        cap = pltpu.get_tpu_info().vmem_capacity_bytes
    except Exception:
        cap = 64 * 1024 * 1024             # conservative (v7x-class) fallback
    return int(max(cap - headroom, floor))


def _make_kernel(heads, bb, t, matmul_dtype, ffn_chunk=512):
    md = matmul_dtype

    def kernel(x_ref,
               wq_ref, wk_ref, wv_ref, wp_ref, bp_ref,
               g1_ref, be1_ref,
               w1_ref, b1_ref, w2_ref, b2_ref,
               g2_ref, be2_ref,
               o_ref):
        f32 = jnp.float32
        x_raw = x_ref[...]                 # (R, c) with R = bb * t
        x_f32 = x_raw.astype(f32)
        x_mm = x_raw.astype(md)
        R, c = x_f32.shape
        s = c // heads
        scale = 1.0 / (c ** 0.5)           # module scales by 1/sqrt(c), not 1/sqrt(head_dim)

        # --- q, k, v projections: large-M MXU matmuls (weights pre-transposed: y = x @ W^T),
        #     bf16 operands, f32 accumulation; 1/sqrt(c) folded into q once. ---
        q = jnp.dot(x_mm, wq_ref[...], preferred_element_type=f32) * scale
        k = jnp.dot(x_mm, wk_ref[...], preferred_element_type=f32)
        v = jnp.dot(x_mm, wv_ref[...], preferred_element_type=f32)

        # --- split heads exactly like the PyTorch module:
        #     (R, c) -> (bb, t, h, s) -> (bb, h, t, s) -> (bb*h, t, s) ---
        def split_heads(z):
            return (z.astype(md)
                     .reshape(bb, t, heads, s)
                     .transpose(0, 2, 1, 3)
                     .reshape(bb * heads, t, s))

        q3, k3, v3 = split_heads(q), split_heads(k), split_heads(v)

        # --- causal mask built once per grid step, shared across batch & heads ---
        row_i = jax.lax.broadcasted_iota(jnp.int32, (t, t), 0)
        col_i = jax.lax.broadcasted_iota(jnp.int32, (t, t), 1)
        causal = (row_i >= col_i)[None, :, :]                       # (1, t, t)

        # --- attention: ONE batched einsum over all bb*heads problems (no per-head loop).
        # TODO(synk): KV-tiled online-softmax (flash) path for long t.
        scores = jnp.einsum('fqs,fks->fqk', q3, k3,
                            preferred_element_type=f32)             # (f, t, t) f32
        scores = jnp.where(causal, scores, -1e30)
        scores = scores - jnp.max(scores, axis=-1, keepdims=True)
        e = jnp.exp(scores)
        p = e / jnp.sum(e, axis=-1, keepdims=True)                  # exact divide (parity)

        attn = jnp.einsum('fqk,fks->fqs', p.astype(md), v3,
                          preferred_element_type=f32)               # (f, t, s) f32
        attn = (attn.reshape(bb, heads, t, s)
                    .transpose(0, 2, 1, 3)
                    .reshape(R, c))

        # --- output projection: single large-M matmul + bias ---
        y = jnp.dot(attn.astype(md), wp_ref[...],
                    preferred_element_type=f32) + bp_ref[...]

        # --- residual + LayerNorm1 (f32) ---
        x1 = x_f32 + _layernorm(y, g1_ref[...], be1_ref[...])

        # --- feed-forward (Linear -> ReLU -> Linear), hidden dim in lane chunks so the
        #     full (R, gc) hidden activation is never live ---
        gc = w1_ref.shape[1]
        chunk = gc if (gc <= ffn_chunk or gc % ffn_chunk != 0) else ffn_chunk
        x1_mm = x1.astype(md)
        ff = jnp.zeros((R, c), f32)
        for lo in range(0, gc, chunk):
            h = jnp.dot(x1_mm, w1_ref[:, lo:lo + chunk],
                        preferred_element_type=f32) + b1_ref[:, lo:lo + chunk]
            h = jnp.maximum(h, 0.0)
            ff = ff + jnp.dot(h.astype(md), w2_ref[lo:lo + chunk, :],
                              preferred_element_type=f32)
        ff = ff + b2_ref[...]

        # --- residual + LayerNorm2; dropout is identity (inference semantics) ---
        # TODO(synk): training-mode dropout not implemented.
        out = x1 + _layernorm(ff, g2_ref[...], be2_ref[...])
        o_ref[...] = out.astype(o_ref.dtype)

    return kernel


def transformer_block(x, params, heads, *, matmul_dtype=jnp.bfloat16):
    b, t, c = x.shape
    assert c % heads == 0
    gc = params["w_ff1"].shape[0]                  # growth * c

    bb = _pick_batch_tile(b, t)                    # batch elements per grid step
    R = bb * t                                     # rows per grid step
    grid = (b // bb,)

    # nn.Linear stores (out, in); pre-transpose so the kernel does y = x @ W^T.
    # Matmul weights are cast ONCE here to the MXU dtype (bf16 default) — halves their
    # DMA/VMEM footprint; biases and LayerNorm affine params stay f32 (f32 accumulators).
    wt = lambda w: jnp.asarray(w).T.astype(matmul_dtype)
    row = lambda a: jnp.asarray(a, jnp.float32).reshape(1, -1)

    x2d = x.reshape(b * t, c)                      # fold batch+seq into the row axis

    full2d = lambda shp: pl.BlockSpec(shp, lambda i: (0, 0))
    # TODO(synk): weights are grid-invariant; single-buffer them (pl.Buffered(1) or a
    #             one-shot manual DMA) to halve their VMEM footprint at large c.

    grid_spec = pltpu.PrefetchScalarGridSpec(
        num_scalar_prefetch=0,
        grid=grid,
        in_specs=[
            pl.BlockSpec((R, c), lambda i: (i, 0)),          # x rows
            full2d((c, c)), full2d((c, c)), full2d((c, c)),  # Wq^T, Wk^T, Wv^T
            full2d((c, c)), full2d((1, c)),                  # Wp^T, bp
            full2d((1, c)), full2d((1, c)),                  # ln1 gamma, beta
            full2d((c, gc)), full2d((1, gc)),                # Wff1^T, bff1
            full2d((gc, c)), full2d((1, c)),                 # Wff2^T, bff2
            full2d((1, c)), full2d((1, c)),                  # ln2 gamma, beta
        ],
        out_specs=pl.BlockSpec((R, c), lambda i: (i, 0)),
    )
    # TODO(synk): for c < 128 (as in the test) the output store is lane-masked; pad c to
    #             128 in the wrapper for production small-c use.

    out2d = pl.pallas_call(
        _make_kernel(heads, bb, t, matmul_dtype),
        out_shape=jax.ShapeDtypeStruct((b * t, c), x.dtype),
        grid_spec=grid_spec,
        compiler_params=pltpu.CompilerParams(
            dimension_semantics=("parallel",),     # row tiles shard across TCs on v7x
            vmem_limit_bytes=_vmem_limit_bytes(),
        ),
    )(
        x2d,
        wt(params["w_q"]), wt(params["w_k"]), wt(params["w_v"]),
        wt(params["w_p"]), row(params["b_p"]),
        row(params["ln1_g"]), row(params["ln1_b"]),
        wt(params["w_ff1"]), row(params["b_ff1"]),
        wt(params["w_ff2"]), row(params["b_ff2"]),
        row(params["ln2_g"]), row(params["ln2_b"]),
    )
    return out2d.reshape(b, t, c)


def transformer_block_ref(x, params, heads, matmul_dtype=jnp.float32):
    """Pure-JAX reference mirroring the PyTorch forward.

    With matmul_dtype=float32 this is the exact spec; with bfloat16 it mirrors the
    kernel's mixed-precision policy (bf16 MXU operands, f32 accumulate / LN / softmax)
    so the production bf16 kernel can be checked against a matched-precision oracle.
    """
    f32 = jnp.float32
    md = matmul_dtype
    b, t, c = x.shape
    s = c // heads
    xf = x.astype(f32)

    def linear(z, w, bias=None):
        y = jnp.einsum('btc,oc->bto', z.astype(md), jnp.asarray(w).astype(md),
                       preferred_element_type=f32)
        return y if bias is None else y + bias

    q = linear(xf, params['w_q']) * (1.0 / (c ** 0.5))
    k = linear(xf, params['w_k'])
    v = linear(xf, params['w_v'])

    def split(z):  # (b,t,c) -> (b*h, t, s)
        return (z.astype(md).reshape(b, t, heads, s)
                 .transpose(0, 2, 1, 3).reshape(b * heads, t, s))

    q3, k3, v3 = split(q), split(k), split(v)
    w = jnp.einsum('fqs,fks->fqk', q3, k3, preferred_element_type=f32)
    mask = jnp.tril(jnp.ones((t, t), dtype=bool))
    w = jnp.where(mask, w, -jnp.inf)
    w = jax.nn.softmax(w, axis=-1)
    out = jnp.einsum('fqk,fks->fqs', w.astype(md), v3, preferred_element_type=f32)
    out = out.reshape(b, heads, t, s).transpose(0, 2, 1, 3).reshape(b, t, c)
    out = linear(out, params['w_p'], params['b_p'])

    def ln(z, g, be, eps=1e-5):
        mu = z.mean(-1, keepdims=True)
        var = ((z - mu) ** 2).mean(-1, keepdims=True)
        return (z - mu) / jnp.sqrt(var + eps) * g + be

    x1 = xf + ln(out, params['ln1_g'], params['ln1_b'])
    h = jax.nn.relu(linear(x1, params['w_ff1'], params['b_ff1']))
    ff = linear(h, params['w_ff2'], params['b_ff2'])
    return x1 + ln(ff, params['ln2_g'], params['ln2_b'])


if __name__ == "__main__":
    # Small shapes consistent with the module: b=2, t=8, c=32, heads=4, growth=2.
    B, T, C, HEADS, GROWTH = 2, 8, 32, 4, 2
    GC = GROWTH * C

    key = jax.random.PRNGKey(0)
    keys = jax.random.split(key, 16)
    params = {
        "w_q":   0.05 * jax.random.normal(keys[0], (C, C), jnp.float32),
        "w_k":   0.05 * jax.random.normal(keys[1], (C, C), jnp.float32),
        "w_v":   0.05 * jax.random.normal(keys[2], (C, C), jnp.float32),
        "w_p":   0.05 * jax.random.normal(keys[3], (C, C), jnp.float32),
        "b_p":   0.05 * jax.random.normal(keys[4], (C,), jnp.float32),
        "ln1_g": 1.0 + 0.1 * jax.random.normal(keys[5], (C,), jnp.float32),
        "ln1_b": 0.1 * jax.random.normal(keys[6], (C,), jnp.float32),
        "w_ff1": 0.05 * jax.random.normal(keys[7], (GC, C), jnp.float32),
        "b_ff1": 0.05 * jax.random.normal(keys[8], (GC,), jnp.float32),
        "w_ff2": 0.05 * jax.random.normal(keys[9], (C, GC), jnp.float32),
        "b_ff2": 0.05 * jax.random.normal(keys[10], (C,), jnp.float32),
        "ln2_g": 1.0 + 0.1 * jax.random.normal(keys[11], (C,), jnp.float32),
        "ln2_b": 0.1 * jax.random.normal(keys[12], (C,), jnp.float32),
    }
    x = jax.random.normal(keys[13], (B, T, C), jnp.float32)

    # Production path: bf16 MXU operands, f32 accumulation (per perf feedback).
    out_bf16 = jax.block_until_ready(
        transformer_block(x, params, HEADS, matmul_dtype=jnp.bfloat16))
    # Exact-precision path: all-f32 matmuls, used for the strict semantic check.
    out_f32 = jax.block_until_ready(
        transformer_block(x, params, HEADS, matmul_dtype=jnp.float32))

    assert out_bf16.shape == (B, T, C) and out_f32.shape == (B, T, C)

    ref_f32 = transformer_block_ref(x, params, HEADS, matmul_dtype=jnp.float32)
    ref_bf16 = transformer_block_ref(x, params, HEADS, matmul_dtype=jnp.bfloat16)

    # 1) Exact-precision kernel vs the exact spec reference (strict).
    err_f32 = float(jnp.max(jnp.abs(out_f32 - ref_f32)))
    assert jnp.allclose(out_f32, ref_f32, atol=5e-3, rtol=5e-3), err_f32
    # 2) bf16 production kernel vs a matched-precision reference (tight: same casts).
    err_bf16 = float(jnp.max(jnp.abs(out_bf16 - ref_bf16)))
    assert jnp.allclose(out_bf16, ref_bf16, atol=2e-3, rtol=2e-3), err_bf16
    # 3) bf16 production kernel vs the exact spec (loose: bounds bf16 rounding drift).
    err_mix = float(jnp.max(jnp.abs(out_bf16 - ref_f32)))
    assert jnp.allclose(out_bf16, ref_f32, atol=1e-1, rtol=1e-1), err_mix

    print("KERNEL_OK")
</pallas_src>

<mosaic_0001>
module attributes {stable_mosaic.version = 11 : i64} {
  func.func @kernel(%arg0: i32, %arg1: memref<8x32xf32, #tpu.memory_space<vmem>>, %arg2: memref<32x32xbf16, #tpu.memory_space<vmem>>, %arg3: memref<32x32xbf16, #tpu.memory_space<vmem>>, %arg4: memref<32x32xbf16, #tpu.memory_space<vmem>>, %arg5: memref<32x32xbf16, #tpu.memory_space<vmem>>, %arg6: memref<1x32xf32, #tpu.memory_space<vmem>>, %arg7: memref<1x32xf32, #tpu.memory_space<vmem>>, %arg8: memref<1x32xf32, #tpu.memory_space<vmem>>, %arg9: memref<32x64xbf16, #tpu.memory_space<vmem>>, %arg10: memref<1x64xf32, #tpu.memory_space<vmem>>, %arg11: memref<64x32xbf16, #tpu.memory_space<vmem>>, %arg12: memref<1x32xf32, #tpu.memory_space<vmem>>, %arg13: memref<1x32xf32, #tpu.memory_space<vmem>>, %arg14: memref<1x32xf32, #tpu.memory_space<vmem>>, %arg15: memref<8x32xf32, #tpu.memory_space<vmem>>) attributes {dimension_semantics = [#tpu.dimension_semantics<parallel>], iteration_bounds = array<i64: 2>, scalar_prefetch = 0 : i64, scratch_operands = 0 : i64, tpu.core_type = #tpu.core_type<tc>, window_params = [{transform_indices = @transform_0, window_bounds = array<i64: 8, 32>}, {pipeline_mode = #tpu.pipeline_mode<synchronous>, transform_indices = @transform_1, window_bounds = array<i64: 32, 32>}, {pipeline_mode = #tpu.pipeline_mode<synchronous>, transform_indices = @transform_2, window_bounds = array<i64: 32, 32>}, {pipeline_mode = #tpu.pipeline_mode<synchronous>, transform_indices = @transform_3, window_bounds = array<i64: 32, 32>}, {pipeline_mode = #tpu.pipeline_mode<synchronous>, transform_indices = @transform_4, window_bounds = array<i64: 32, 32>}, {pipeline_mode = #tpu.pipeline_mode<synchronous>, transform_indices = @transform_5, window_bounds = array<i64: 1, 32>}, {pipeline_mode = #tpu.pipeline_mode<synchronous>, transform_indices = @transform_6, window_bounds = array<i64: 1, 32>}, {pipeline_mode = #tpu.pipeline_mode<synchronous>, transform_indices = @transform_7, window_bounds = array<i64: 1, 32>}, {pipeline_mode = #tpu.pipeline_mode<synchronous>, transform_indices = @transform_8, window_bounds = array<i64: 32, 64>}, {pipeline_mode = #tpu.pipeline_mode<synchronous>, transform_indices = @transform_9, window_bounds = array<i64: 1, 64>}, {pipeline_mode = #tpu.pipeline_mode<synchronous>, transform_indices = @transform_10, window_bounds = array<i64: 64, 32>}, {pipeline_mode = #tpu.pipeline_mode<synchronous>, transform_indices = @transform_11, window_bounds = array<i64: 1, 32>}, {pipeline_mode = #tpu.pipeline_mode<synchronous>, transform_indices = @transform_12, window_bounds = array<i64: 1, 32>}, {pipeline_mode = #tpu.pipeline_mode<synchronous>, transform_indices = @transform_13, window_bounds = array<i64: 1, 32>}, {transform_indices = @transform_14, window_bounds = array<i64: 8, 32>}]} {
    %c0 = arith.constant 0 : index
    %c0_0 = arith.constant 0 : index
    %0 = vector.load %arg1[%c0, %c0_0] : memref<8x32xf32, #tpu.memory_space<vmem>>, vector<8x32xf32>
    %1 = arith.truncf %0 : vector<8x32xf32> to vector<8x32xbf16>
    %c0_1 = arith.constant 0 : index
    %c0_2 = arith.constant 0 : index
    %2 = vector.load %arg2[%c0_1, %c0_2] : memref<32x32xbf16, #tpu.memory_space<vmem>>, vector<32x32xbf16>
    %cst = arith.constant dense<0.000000e+00> : vector<8x32xf32>
    %3 = tpu.matmul %1, %2, %cst {dimension_numbers = #tpu.dot_dimension_numbers<[1], [0], [0], [1], [0, 0, 1, 1], [], []>} : vector<8x32xbf16>, vector<32x32xbf16>, vector<8x32xf32> -> vector<8x32xf32>
    %cst_3 = arith.constant 0.176776692 : f32
    %4 = vector.broadcast %cst_3 : f32 to vector<8x32xf32>
    %5 = arith.mulf %3, %4 : vector<8x32xf32>
    %c0_4 = arith.constant 0 : index
    %c0_5 = arith.constant 0 : index
    %6 = vector.load %arg3[%c0_4, %c0_5] : memref<32x32xbf16, #tpu.memory_space<vmem>>, vector<32x32xbf16>
    %cst_6 = arith.constant dense<0.000000e+00> : vector<8x32xf32>
    %7 = tpu.matmul %1, %6, %cst_6 {dimension_numbers = #tpu.dot_dimension_numbers<[1], [0], [0], [1], [0, 0, 1, 1], [], []>} : vector<8x32xbf16>, vector<32x32xbf16>, vector<8x32xf32> -> vector<8x32xf32>
    %c0_7 = arith.constant 0 : index
    %c0_8 = arith.constant 0 : index
    %8 = vector.load %arg4[%c0_7, %c0_8] : memref<32x32xbf16, #tpu.memory_space<vmem>>, vector<32x32xbf16>
    %cst_9 = arith.constant dense<0.000000e+00> : vector<8x32xf32>
    %9 = tpu.matmul %1, %8, %cst_9 {dimension_numbers = #tpu.dot_dimension_numbers<[1], [0], [0], [1], [0, 0, 1, 1], [], []>} : vector<8x32xbf16>, vector<32x32xbf16>, vector<8x32xf32> -> vector<8x32xf32>
    %10 = arith.truncf %5 : vector<8x32xf32> to vector<8x32xbf16>
    %11 = vector.shape_cast %10 : vector<8x32xbf16> to vector<1x8x4x8xbf16>
    %12 = tpu.transpose %11, [0, 2, 1, 3] : vector<1x8x4x8xbf16> -> vector<1x4x8x8xbf16>
    %13 = vector.shape_cast %12 : vector<1x4x8x8xbf16> to vector<4x8x8xbf16>
    %14 = arith.truncf %7 : vector<8x32xf32> to vector<8x32xbf16>
    %15 = vector.shape_cast %14 : vector<8x32xbf16> to vector<1x8x4x8xbf16>
    %16 = tpu.transpose %15, [0, 2, 1, 3] : vector<1x8x4x8xbf16> -> vector<1x4x8x8xbf16>
    %17 = vector.shape_cast %16 : vector<1x4x8x8xbf16> to vector<4x8x8xbf16>
    %18 = arith.truncf %9 : vector<8x32xf32> to vector<8x32xbf16>
    %19 = vector.shape_cast %18 : vector<8x32xbf16> to vector<1x8x4x8xbf16>
    %20 = tpu.transpose %19, [0, 2, 1, 3] : vector<1x8x4x8xbf16> -> vector<1x4x8x8xbf16>
    %21 = vector.shape_cast %20 : vector<1x4x8x8xbf16> to vector<4x8x8xbf16>
    %22 = tpu.iota {dimensions = array<i32: 0>} : vector<8x8xi32>
    %23 = tpu.iota {dimensions = array<i32: 1>} : vector<8x8xi32>
    %24 = arith.cmpi sge, %22, %23 : vector<8x8xi32>
    %25 = vector.shape_cast %24 : vector<8x8xi1> to vector<1x8x8xi1>
    "tpu.trace_start"() <{level = 10 : i32, message = "fqs,fks->fqk"}> : () -> ()
    %cst_10 = arith.constant dense<0.000000e+00> : vector<4x8x8xf32>
    %26 = tpu.matmul %13, %17, %cst_10 {dimension_numbers = #tpu.dot_dimension_numbers<[2], [2], [1], [1], [0, 0, 0, 1, 1, 1], [0], [0]>} : vector<4x8x8xbf16>, vector<4x8x8xbf16>, vector<4x8x8xf32> -> vector<4x8x8xf32>
    %cst_11 = arith.constant -1.000000e+30 : f32
    "tpu.trace_stop"() : () -> ()
    %27 = vector.shape_cast %25 : vector<1x8x8xi1> to vector<1x8x8xi1>
    %28 = vector.broadcast %27 : vector<1x8x8xi1> to vector<4x8x8xi1>
    %29 = vector.broadcast %cst_11 : f32 to vector<4x8x8xf32>
    %30 = arith.select %28, %26, %29 : vector<4x8x8xi1>, vector<4x8x8xf32>
    %cst_12 = arith.constant dense<0xFF800000> : vector<4x8xf32>
    %31 = vector.multi_reduction <maximumf>, %30, %cst_12 [2] : vector<4x8x8xf32> to vector<4x8xf32>
    %32 = vector.shape_cast %31 : vector<4x8xf32> to vector<4x8x1xf32>
    %33 = vector.broadcast %32 : vector<4x8x1xf32> to vector<4x8x8xf32>
    %34 = arith.subf %30, %33 : vector<4x8x8xf32>
    %35 = math.exp %34 : vector<4x8x8xf32>
    %cst_13 = arith.constant dense<0.000000e+00> : vector<4x8xf32>
    %36 = vector.multi_reduction <add>, %35, %cst_13 [2] : vector<4x8x8xf32> to vector<4x8xf32>
    %37 = vector.shape_cast %36 : vector<4x8xf32> to vector<4x8x1xf32>
    %38 = vector.broadcast %37 : vector<4x8x1xf32> to vector<4x8x8xf32>
    %39 = arith.divf %35, %38 : vector<4x8x8xf32>
    %40 = arith.truncf %39 : vector<4x8x8xf32> to vector<4x8x8xbf16>
    "tpu.trace_start"() <{level = 10 : i32, message = "fqk,fks->fqs"}> : () -> ()
    %cst_14 = arith.constant dense<0.000000e+00> : vector<4x8x8xf32>
    %41 = tpu.matmul %40, %21, %cst_14 {dimension_numbers = #tpu.dot_dimension_numbers<[2], [1], [1], [2], [0, 0, 0, 1, 1, 2], [0], [0]>} : vector<4x8x8xbf16>, vector<4x8x8xbf16>, vector<4x8x8xf32> -> vector<4x8x8xf32>
    "tpu.trace_stop"() : () -> ()
    %42 = vector.shape_cast %41 : vector<4x8x8xf32> to vector<1x4x8x8xf32>
    %43 = tpu.transpose %42, [0, 2, 1, 3] : vector<1x4x8x8xf32> -> vector<1x8x4x8xf32>
    %44 = vector.shape_cast %43 : vector<1x8x4x8xf32> to vector<8x32xf32>
    %45 = arith.truncf %44 : vector<8x32xf32> to vector<8x32xbf16>
    %c0_15 = arith.constant 0 : index
    %c0_16 = arith.constant 0 : index
    %46 = vector.load %arg5[%c0_15, %c0_16] : memref<32x32xbf16, #tpu.memory_space<vmem>>, vector<32x32xbf16>
    %cst_17 = arith.constant dense<0.000000e+00> : vector<8x32xf32>
    %47 = tpu.matmul %45, %46, %cst_17 {dimension_numbers = #tpu.dot_dimension_numbers<[1], [0], [0], [1], [0, 0, 1, 1], [], []>} : vector<8x32xbf16>, vector<32x32xbf16>, vector<8x32xf32> -> vector<8x32xf32>
    %c0_18 = arith.constant 0 : index
    %c0_19 = arith.constant 0 : index
    %48 = vector.load %arg6[%c0_18, %c0_19] : memref<1x32xf32, #tpu.memory_space<vmem>>, vector<1x32xf32>
    %49 = vector.broadcast %48 : vector<1x32xf32> to vector<8x32xf32>
    %50 = arith.addf %47, %49 : vector<8x32xf32>
    %c0_20 = arith.constant 0 : index
    %c0_21 = arith.constant 0 : index
    %51 = vector.load %arg7[%c0_20, %c0_21] : memref<1x32xf32, #tpu.memory_space<vmem>>, vector<1x32xf32>
    %c0_22 = arith.constant 0 : index
    %c0_23 = arith.constant 0 : index
    %52 = vector.load %arg8[%c0_22, %c0_23] : memref<1x32xf32, #tpu.memory_space<vmem>>, vector<1x32xf32>
    %cst_24 = arith.constant dense<0.000000e+00> : vector<8xf32>
    %53 = vector.multi_reduction <add>, %50, %cst_24 [1] : vector<8x32xf32> to vector<8xf32>
    %54 = vector.shape_cast %53 : vector<8xf32> to vector<8x1xf32>
    %cst_25 = arith.constant 3.200000e+01 : f32
    %55 = vector.broadcast %cst_25 : f32 to vector<8x1xf32>
    %56 = arith.divf %54, %55 : vector<8x1xf32>
    %57 = vector.broadcast %56 : vector<8x1xf32> to vector<8x32xf32>
    %58 = arith.subf %50, %57 : vector<8x32xf32>
    %59 = arith.mulf %58, %58 : vector<8x32xf32>
    %cst_26 = arith.constant dense<0.000000e+00> : vector<8xf32>
    %60 = vector.multi_reduction <add>, %59, %cst_26 [1] : vector<8x32xf32> to vector<8xf32>
    %61 = vector.shape_cast %60 : vector<8xf32> to vector<8x1xf32>
    %cst_27 = arith.constant 3.200000e+01 : f32
    %62 = vector.broadcast %cst_27 : f32 to vector<8x1xf32>
    %63 = arith.divf %61, %62 : vector<8x1xf32>
    %64 = vector.broadcast %56 : vector<8x1xf32> to vector<8x32xf32>
    %65 = arith.subf %50, %64 : vector<8x32xf32>
    %cst_28 = arith.constant 9.99999974E-6 : f32
    %66 = vector.broadcast %cst_28 : f32 to vector<8x1xf32>
    %67 = arith.addf %63, %66 : vector<8x1xf32>
    %68 = math.rsqrt %67 : vector<8x1xf32>
    %69 = vector.broadcast %68 : vector<8x1xf32> to vector<8x32xf32>
    %70 = arith.mulf %65, %69 : vector<8x32xf32>
    %71 = vector.broadcast %51 : vector<1x32xf32> to vector<8x32xf32>
    %72 = arith.mulf %70, %71 : vector<8x32xf32>
    %73 = vector.broadcast %52 : vector<1x32xf32> to vector<8x32xf32>
    %74 = arith.addf %72, %73 : vector<8x32xf32>
    %75 = arith.addf %0, %74 : vector<8x32xf32>
    %76 = arith.truncf %75 : vector<8x32xf32> to vector<8x32xbf16>
    %cst_29 = arith.constant 0.000000e+00 : f32
    %77 = vector.broadcast %cst_29 : f32 to vector<8x32xf32>
    %c0_30 = arith.constant 0 : index
    %c0_31 = arith.constant 0 : index
    %78 = vector.load %arg9[%c0_30, %c0_31] : memref<32x64xbf16, #tpu.memory_space<vmem>>, vector<32x64xbf16>
    %cst_32 = arith.constant dense<0.000000e+00> : vector<8x64xf32>
    %79 = tpu.matmul %76, %78, %cst_32 {dimension_numbers = #tpu.dot_dimension_numbers<[1], [0], [0], [1], [0, 0, 1, 1], [], []>} : vector<8x32xbf16>, vector<32x64xbf16>, vector<8x64xf32> -> vector<8x64xf32>
    %c0_33 = arith.constant 0 : index
    %c0_34 = arith.constant 0 : index
    %80 = vector.load %arg10[%c0_33, %c0_34] : memref<1x64xf32, #tpu.memory_space<vmem>>, vector<1x64xf32>
    %81 = vector.broadcast %80 : vector<1x64xf32> to vector<8x64xf32>
    %82 = arith.addf %79, %81 : vector<8x64xf32>
    %cst_35 = arith.constant 0.000000e+00 : f32
    %83 = vector.broadcast %cst_35 : f32 to vector<8x64xf32>
    %84 = arith.maximumf %82, %83 : vector<8x64xf32>
    %85 = arith.truncf %84 : vector<8x64xf32> to vector<8x64xbf16>
    %c0_36 = arith.constant 0 : index
    %c0_37 = arith.constant 0 : index
    %86 = vector.load %arg11[%c0_36, %c0_37] : memref<64x32xbf16, #tpu.memory_space<vmem>>, vector<64x32xbf16>
    %cst_38 = arith.constant dense<0.000000e+00> : vector<8x32xf32>
    %87 = tpu.matmul %85, %86, %cst_38 {dimension_numbers = #tpu.dot_dimension_numbers<[1], [0], [0], [1], [0, 0, 1, 1], [], []>} : vector<8x64xbf16>, vector<64x32xbf16>, vector<8x32xf32> -> vector<8x32xf32>
    %88 = arith.addf %77, %87 : vector<8x32xf32>
    %c0_39 = arith.constant 0 : index
    %c0_40 = arith.constant 0 : index
    %89 = vector.load %arg12[%c0_39, %c0_40] : memref<1x32xf32, #tpu.memory_space<vmem>>, vector<1x32xf32>
    %90 = vector.broadcast %89 : vector<1x32xf32> to vector<8x32xf32>
    %91 = arith.addf %88, %90 : vector<8x32xf32>
    %c0_41 = arith.constant 0 : index
    %c0_42 = arith.constant 0 : index
    %92 = vector.load %arg13[%c0_41, %c0_42] : memref<1x32xf32, #tpu.memory_space<vmem>>, vector<1x32xf32>
    %c0_43 = arith.constant 0 : index
    %c0_44 = arith.constant 0 : index
    %93 = vector.load %arg14[%c0_43, %c0_44] : memref<1x32xf32, #tpu.memory_space<vmem>>, vector<1x32xf32>
    %cst_45 = arith.constant dense<0.000000e+00> : vector<8xf32>
    %94 = vector.multi_reduction <add>, %91, %cst_45 [1] : vector<8x32xf32> to vector<8xf32>
    %95 = vector.shape_cast %94 : vector<8xf32> to vector<8x1xf32>
    %cst_46 = arith.constant 3.200000e+01 : f32
    %96 = vector.broadcast %cst_46 : f32 to vector<8x1xf32>
    %97 = arith.divf %95, %96 : vector<8x1xf32>
    %98 = vector.broadcast %97 : vector<8x1xf32> to vector<8x32xf32>
    %99 = arith.subf %91, %98 : vector<8x32xf32>
    %100 = arith.mulf %99, %99 : vector<8x32xf32>
    %cst_47 = arith.constant dense<0.000000e+00> : vector<8xf32>
    %101 = vector.multi_reduction <add>, %100, %cst_47 [1] : vector<8x32xf32> to vector<8xf32>
    %102 = vector.shape_cast %101 : vector<8xf32> to vector<8x1xf32>
    %cst_48 = arith.constant 3.200000e+01 : f32
    %103 = vector.broadcast %cst_48 : f32 to vector<8x1xf32>
    %104 = arith.divf %102, %103 : vector<8x1xf32>
    %105 = vector.broadcast %97 : vector<8x1xf32> to vector<8x32xf32>
    %106 = arith.subf %91, %105 : vector<8x32xf32>
    %cst_49 = arith.constant 9.99999974E-6 : f32
    %107 = vector.broadcast %cst_49 : f32 to vector<8x1xf32>
    %108 = arith.addf %104, %107 : vector<8x1xf32>
    %109 = math.rsqrt %108 : vector<8x1xf32>
    %110 = vector.broadcast %109 : vector<8x1xf32> to vector<8x32xf32>
    %111 = arith.mulf %106, %110 : vector<8x32xf32>
    %112 = vector.broadcast %92 : vector<1x32xf32> to vector<8x32xf32>
    %113 = arith.mulf %111, %112 : vector<8x32xf32>
    %114 = vector.broadcast %93 : vector<1x32xf32> to vector<8x32xf32>
    %115 = arith.addf %113, %114 : vector<8x32xf32>
    %116 = arith.addf %75, %115 : vector<8x32xf32>
    %c0_50 = arith.constant 0 : index
    %c0_51 = arith.constant 0 : index
    %117 = vector.load %arg15[%c0_50, %c0_51] : memref<8x32xf32, #tpu.memory_space<vmem>>, vector<8x32xf32>
    tpu.vector_store %arg15[%c0_50, %c0_51], %116 {strides = array<i32>} : memref<8x32xf32, #tpu.memory_space<vmem>>, vector<8x32xf32>,
    return
  }
  func.func @transform_0(%arg0: i32) -> (i32, i32) {
    %c0_i32 = arith.constant 0 : i32
    %c0_i32_0 = arith.constant 0 : i32
    return %arg0, %c0_i32 : i32, i32
  }
  func.func @transform_1(%arg0: i32) -> (i32, i32) {
    %c0_i32 = arith.constant 0 : i32
    %c0_i32_0 = arith.constant 0 : i32
    %c0_i32_1 = arith.constant 0 : i32
    return %c0_i32, %c0_i32_0 : i32, i32
  }
  func.func @transform_2(%arg0: i32) -> (i32, i32) {
    %c0_i32 = arith.constant 0 : i32
    %c0_i32_0 = arith.constant 0 : i32
    %c0_i32_1 = arith.constant 0 : i32
    return %c0_i32, %c0_i32_0 : i32, i32
  }
  func.func @transform_3(%arg0: i32) -> (i32, i32) {
    %c0_i32 = arith.constant 0 : i32
    %c0_i32_0 = arith.constant 0 : i32
    %c0_i32_1 = arith.constant 0 : i32
    return %c0_i32, %c0_i32_0 : i32, i32
  }
  func.func @transform_4(%arg0: i32) -> (i32, i32) {
    %c0_i32 = arith.constant 0 : i32
    %c0_i32_0 = arith.constant 0 : i32
    %c0_i32_1 = arith.constant 0 : i32
    return %c0_i32, %c0_i32_0 : i32, i32
  }
  func.func @transform_5(%arg0: i32) -> (i32, i32) {
    %c0_i32 = arith.constant 0 : i32
    %c0_i32_0 = arith.constant 0 : i32
    %c0_i32_1 = arith.constant 0 : i32
    return %c0_i32, %c0_i32_0 : i32, i32
  }
  func.func @transform_6(%arg0: i32) -> (i32, i32) {
    %c0_i32 = arith.constant 0 : i32
    %c0_i32_0 = arith.constant 0 : i32
    %c0_i32_1 = arith.constant 0 : i32
    return %c0_i32, %c0_i32_0 : i32, i32
  }
  func.func @transform_7(%arg0: i32) -> (i32, i32) {
    %c0_i32 = arith.constant 0 : i32
    %c0_i32_0 = arith.constant 0 : i32
    %c0_i32_1 = arith.constant 0 : i32
    return %c0_i32, %c0_i32_0 : i32, i32
  }
  func.func @transform_8(%arg0: i32) -> (i32, i32) {
    %c0_i32 = arith.constant 0 : i32
    %c0_i32_0 = arith.constant 0 : i32
    %c0_i32_1 = arith.constant 0 : i32
    return %c0_i32, %c0_i32_0 : i32, i32
  }
  func.func @transform_9(%arg0: i32) -> (i32, i32) {
    %c0_i32 = arith.constant 0 : i32
    %c0_i32_0 = arith.constant 0 : i32
    %c0_i32_1 = arith.constant 0 : i32
    return %c0_i32, %c0_i32_0 : i32, i32
  }
  func.func @transform_10(%arg0: i32) -> (i32, i32) {
    %c0_i32 = arith.constant 0 : i32
    %c0_i32_0 = arith.constant 0 : i32
    %c0_i32_1 = arith.constant 0 : i32
    return %c0_i32, %c0_i32_0 : i32, i32
  }
  func.func @transform_11(%arg0: i32) -> (i32, i32) {
    %c0_i32 = arith.constant 0 : i32
    %c0_i32_0 = arith.constant 0 : i32
    %c0_i32_1 = arith.constant 0 : i32
    return %c0_i32, %c0_i32_0 : i32, i32
  }
  func.func @transform_12(%arg0: i32) -> (i32, i32) {
    %c0_i32 = arith.constant 0 : i32
    %c0_i32_0 = arith.constant 0 : i32
    %c0_i32_1 = arith.constant 0 : i32
    return %c0_i32, %c0_i32_0 : i32, i32
  }
  func.func @transform_13(%arg0: i32) -> (i32, i32) {
    %c0_i32 = arith.constant 0 : i32
    %c0_i32_0 = arith.constant 0 : i32
    %c0_i32_1 = arith.constant 0 : i32
    return %c0_i32, %c0_i32_0 : i32, i32
  }
  func.func @transform_14(%arg0: i32) -> (i32, i32) {
    %c0_i32 = arith.constant 0 : i32
    %c0_i32_0 = arith.constant 0 : i32
    return %arg0, %c0_i32 : i32, i32
  }
}

</mosaic_0001>

<bundles_post_ra>
// kernel: tpu_custom_call.1
= control target key start
LH: loop header
LB: loop body
LE: loop exit
PB: predicated region body
PF: predicated region fallthrough
CT: control target
= control target key end

     0   :  { %s3233_s0 = inlined_call_operand.vmem [shape: f32[16,32], index: 0, kind: input, shape index: {}]   ;;  %s3234_s1 = inlined_call_operand.vmem [shape: bf16[32,32], index: 1, kind: input, shape index: {}]   ;;  %s3235_s2 = inlined_call_operand.vmem [shape: bf16[32,32], index: 2, kind: input, shape index: {}]   ;;  %s3236_s3 = inlined_call_operand.hbm [shape: bf16[32,32], index: 3, kind: input, shape index: {}]   ;;  %s3237_s4 = inlined_call_operand.hbm [shape: bf16[32,32], index: 4, kind: input, shape index: {}]   ;;  %s3238_s5 = inlined_call_operand.vmem [shape: f32[1,32], index: 5, kind: input, shape index: {}]   ;;  %s3239_s6 = inlined_call_operand.vmem [shape: f32[1,32], index: 6, kind: input, shape index: {}]   ;;  %s3240_s7 = inlined_call_operand.hbm [shape: f32[1,32], index: 7, kind: input, shape index: {}]   ;;  %s3241_s8 = inlined_call_operand.hbm [shape: bf16[32,64], index: 8, kind: input, shape index: {}]   ;;  %s3242_s9 = inlined_call_operand.hbm [shape: f32[1,64], index: 9, kind: input, shape index: {}]   ;;  %s3243_s10 = inlined_call_operand.vmem [shape: bf16[64,32], index: 10, kind: input, shape index: {}]   ;;  %s3244_s11 = inlined_call_operand.vmem [shape: f32[1,32], index: 11, kind: input, shape index: {}]   ;;  %s3245_s12 = inlined_call_operand.vmem [shape: f32[1,32], index: 12, kind: input, shape index: {}]   ;;  %s3246_s13 = inlined_call_operand.vmem [shape: f32[1,32], index: 13, kind: input, shape index: {}]   ;;  %s3247_s14 = inlined_call_operand.hbm [shape: f32[16,32], index: 14, kind: output, shape index: {}]  }
   0x1   :  { %3257 = sst [smem:[#allocation22_spill]] %s3237_s4 }
   0x2   :  { %19 = vsyncpa [#allocation3], 0 }
   0x3   :  { %20 = vsyncpa [#allocation6], 0 }
   0x4   :  { %21 = vsyncpa [#allocation9], 0 }
   0x5   :  { %22 = vsyncpa [#allocation4], 0 }
   0x6   :  { %24 = vsyncpa [#allocation4 + $0x1], 0  ;;  %s2829_s29 = smov 0   ;;  %s2831_s30 = smov 0  }
   0x7   :  { %s2833_s15 = smov 0   ;;  %s2835_s16 = smov 0  }
   0x8 LB: > { %3258 = sst [smem:[#allocation16_spill]] %s2721_s29  ;;  %s2850_s17 = sadd.s32 4294967295, %s2733_s16   ;;  %s2733_s16 = sphi %s2835_s16, %s3282_s16   ;;  %s2729_s15 = sphi %s2833_s15, %s3284_s15   ;;  %s2725_s30 = sphi %s2831_s30, %s3286_s30   ;;  %s2721_s29 = sphi %s2829_s29, %s3285_s29  }
   0x9   : > { %3259 = sst [smem:[#allocation17_spill]] %s2729_s15  ;;  %s2201_s18 = sadd.s32 4294967294, %s2733_s16  }
   0xa   : > { %3260 = sst [smem:[#allocation18_spill]] %s2733_s16  ;;  %s2854_s19 = sadd.s32 1, %s2733_s16  }
   0xb   : > { %3261 = sst [smem:[#allocation19_spill]] %s2854_s19  ;;  %s336_s20 = sadd.s32 1, %s2729_s15 }
   0xc   : > { %s333_s21 = ssub.s32 %s2733_s16, %s2854_s19  ;;  %p346_p0 = scmp.ne.s32.totalorder %s2729_s15, %s2725_s30 }
   0xd   : > { %p334_p1 = scmp.eq.s32.totalorder %s333_s21, 0  ;;  %p347_p2 = scmp.eq.s32.totalorder %s2850_s17, 1 }
   0xe   : > { %p352_p3 = scmp.ne.s32.totalorder %s2725_s30, %s2721_s29  ;;  %p353_p4 = scmp.eq.s32.totalorder %s2201_s18, 1 }
   0xf   : > { %s2865_s22 = scalar_select %p334_p1, %s2729_s15, %s336_s20  }
  0x10   : > { %p2867_p5 = por %p347_p2, %p346_p0  ;;  %p2871_p6 = por %p353_p4, %p352_p3 }
  0x11   : > { %3262 = sst [smem:[#allocation20_spill]] %s2865_s22  ;;  %p2202_p7 = scmp.ge.s32.totalorder %s2733_s16, 1 }
  0x12   : > { %s3263_s23 = scalar_select %p2867_p5, 1, 0 }
  0x13   : > { %s3264_s24 = scalar_select %p2871_p6, 1, 0 }
  0x14   : > { %p360_p8 = scmp.lt.s32.totalorder %s2733_s16, 3  ;;  %p3253_p9 = scmp.eq.s32.totalorder %s2850_s17, 0 }
  0x15   : > { %3265 = sst [smem:[#allocation21_spill]] %s3264_s24  ;;  %s2735_s26 = smov [#allocation5]  }
  0x16   : > { %p2878_p10 = pnand %p2202_p7, %p360_p8  ;;  %s391_s27 = sshll.u32 %s2735_s26, 4  ;;  %s392_s27 = int_to_ptr.vmem [resolvable:$true] %s391_s27 }
  0x17   : > { %s2736_s18 = smov [#allocation8]   ;;  %s2737_s21 = smov [#allocation2]  }
  0x18   : > { %s3266_s25 = scalar_select %p2878_p10, 1, 0 }
  0x19   : > { %p2416_p11 = pneg %p2878_p10  ;;  %s421_s20 = sshll.u32 %s2736_s18, 4  ;;  %s422_s20 = int_to_ptr.vmem [resolvable:$true] %s421_s20 }
  0x1a   : > { %s378_s22 = sshll.u32 %s2737_s21, 4  ;;  %s2542_s19 = scalar_lea.vmem %s392_s27, 256  ;;  %s379_s22 = int_to_ptr.vmem [resolvable:$true] %s378_s22 }
  0x1b   : > { %p2886_p12 = pnand %p3253_p9, %p2416_p11  ;;  %p2543_p0 = scmp.ne.s32.totalorder %s392_s27, %s2542_s19 }
  0x1c   : > { %p2550_p3 = scmp.lt.s32.totalorder %s392_s27, %s392_s27  ;;  %p2551_p4 = scmp.lt.s32.totalorder %s2542_s19, %s2542_s19 }
  0x1d   : > { %p2892_p13 = pneg %p2886_p12 }
  0x1e   : > { %p2552_p7 = por %p2551_p4, %p2550_p3 }
  0x1f   : > { %p2545_p1 = pnand %p2543_p0, %p2892_p13 }
  0x21   : > { %p2546_p2 = pneg %p2545_p1 }
  0x23   : > { %p2553_p8 = pnand %p2552_p7, %p2546_p2 }
  0x25   : > { %2556 = shalt.err (!%p2553_p8)
}
  0x26   : > { %s2738_s26 = smov 64   ;;  %s2739_s18 = smov 4  }
  0x27   : > { %s3269_s4 = sld [smem:[#allocation22_spill]]  ;;  %s2568_s29 = scalar_lea.vmem %s422_s20, 256 }
  0x28   : > { %p2569_p11 = scmp.ne.s32.totalorder %s422_s20, %s2568_s29  ;;  %p2576_p1 = scmp.lt.s32.totalorder %s422_s20, %s422_s20 }
  0x29   : > { %p2577_p6 = scmp.lt.s32.totalorder %s2568_s29, %s2568_s29 }
  0x2a   : > { %p2571_p9 = pnand %p2569_p11, %p2892_p13 }
  0x2b   : > { %p2578_p5 = por %p2577_p6, %p2576_p1 }
  0x2c   : > { %p2572_p0 = pneg %p2571_p9 }
  0x2d   : > { %2422 = dma.hbm_to_vmem [thread:$0]  (!%p2886_p12), %s3269_s4, 256, %s392_s27, [#allocation6], %s2738_s26, %s2738_s26, %s2739_s18  }
  0x2e   : > { %p2579_p3 = pnand %p2578_p5, %p2572_p0 }
  0x30   : > { %2582 = shalt.err (!%p2579_p3)
}
  0x31   : > { %2428 = dma.hbm_to_vmem [thread:$0]  (!%p2886_p12), %s3241_s8, 256, %s422_s20, [#allocation9], %s2738_s26, %s2738_s26, %s2739_s18  }
  0x32   : > { %s2594_s24 = scalar_lea.vmem %s379_s22, 256  ;;  %p2602_p8 = scmp.lt.s32.totalorder %s379_s22, %s379_s22 }
  0x33   : > { %p2595_p2 = scmp.ne.s32.totalorder %s379_s22, %s2594_s24  ;;  %p2603_p9 = scmp.lt.s32.totalorder %s2594_s24, %s2594_s24 }
  0x35   : > { %p2597_p4 = pnand %p2595_p2, %p2892_p13  ;;  %p2604_p11 = por %p2603_p9, %p2602_p8 }
  0x37   : > { %p2598_p7 = pneg %p2597_p4 }
  0x39   : > { %p2605_p10 = pnand %p2604_p11, %p2598_p7 }
  0x3b   : > { %2608 = shalt.err (!%p2605_p10)
}
  0x3c   : > { %2419 = dma.hbm_to_vmem [thread:$0]  (!%p2886_p12), %s3236_s3, 256, %s379_s22, [#allocation3], %s2738_s26, %s2738_s26, %s2739_s18  }
  0x3d   : > { %s2740_s16 = smov [#allocation7]   ;;  %s2741_s21 = smov [#allocation10]  }
  0x3e   : > { %s411_s20 = sshll.u32 %s2740_s16, 4  ;;  %s435_s19 = sshll.u32 %s2741_s21, 4  ;;  %s412_s20 = int_to_ptr.vmem [resolvable:$true] %s411_s20  ;;  %s436_s19 = int_to_ptr.vmem [resolvable:$true] %s435_s19 }
  0x3f   : > { %s2620_s4 = scalar_lea.vmem %s412_s20, 16  ;;  %s2627_s24 = scalar_lea.vmem %s412_s20, 32 }
  0x40   : > { %p2621_p5 = scmp.ne.s32.totalorder %s412_s20, %s2620_s4  ;;  %p2628_p1 = scmp.lt.s32.totalorder %s412_s20, %s412_s20 }
  0x41   : > { %p2629_p10 = scmp.lt.s32.totalorder %s2627_s24, %s2620_s4 }
  0x42   : > { %p2623_p6 = pnand %p2621_p5, %p2892_p13 }
  0x43   : > { %p2630_p3 = por %p2629_p10, %p2628_p1 }
  0x44   : > { %p2624_p0 = pneg %p2623_p6 }
  0x46   : > { %p2631_p2 = pnand %p2630_p3, %p2624_p0 }
  0x48   : > { %2634 = shalt.err (!%p2631_p2)
}
  0x49   : > { %2425 = dma.hbm_to_vmem [thread:$0]  (!%p2886_p12), %s3240_s7, 16, %s412_s20, [#allocation6]  }
  0x4a   : > { %s2646_s26 = scalar_lea.vmem %s436_s19, 16  ;;  %s2653_s18 = scalar_lea.vmem %s436_s19, 32 }
  0x4b   : > { %p2647_p4 = scmp.ne.s32.totalorder %s436_s19, %s2646_s26  ;;  %p2654_p9 = scmp.lt.s32.totalorder %s436_s19, %s436_s19 }
  0x4c   : > { %p2655_p11 = scmp.lt.s32.totalorder %s2653_s18, %s2646_s26 }
  0x4d   : > { %p2649_p7 = pnand %p2647_p4, %p2892_p13 }
  0x4e   : > { %p2656_p5 = por %p2655_p11, %p2654_p9 }
  0x4f   : > { %p2650_p8 = pneg %p2649_p7 }
  0x51   : > { %p2657_p6 = pnand %p2656_p5, %p2650_p8 }
  0x53   : > { %2660 = shalt.err (!%p2657_p6)
}
  0x54   : > { %2431 = dma.hbm_to_vmem [thread:$0]  (!%p2886_p12), %s3242_s9, 16, %s436_s19, [#allocation9]  }
  0x55   : > { %p3270_p0 = scmp.ne.s32.totalorder %s3266_s25, 0 }
  0x56   : > { %p3271_p1 = scmp.eq.s32.totalorder (!%p3270_p0), %s2850_s17, 0 }
  0x57   : > { %467 = sbr.rel (%p3270_p0) target bundleno = 2576 (0xa10), region = 76 }
  0x5c   : > { %2704 = dma.done.wait (%p3271_p1), [#allocation3], 256   ;;  %p3272_p13 = pmov %p3271_p1 }
  0x5d   : > { %p3273_p10 = pmov %p3271_p1 }
  0x5e   : > { %2706 = vsyncadd (%p3272_p13), [#allocation3], 4294967040 }
  0x5f   : > { %2708 = dma.done.wait (%p3273_p10), [#allocation6], 272   ;;  %p3274_p3 = pmov %p3271_p1 }
  0x60   : > { %p3275_p2 = pmov %p3271_p1 }
  0x61   : > { %2710 = vsyncadd (%p3274_p3), [#allocation6], 4294967024 }
  0x62   : > { %2712 = dma.done.wait (%p3275_p2), [#allocation9], 272   ;;  %p3276_p12 = pmov %p3271_p1 }
  0x63   : > { %p528_p4 = scmp.lt.s32.totalorder %s2850_s17, 1  ;;  %v2742_v0 = vmov 0.0   ;;  %vm2743_vm0 = vmmov 0   ;;  %v2497_v1 = vld [vmem:[%s3235_s2 + $0x8] sm:$0xff]   ;;  %v2499_v3 = vld [vmem:[%s3235_s2] sm:$0xff]   ;;  %vm551_vm1 = vcmask 261120   ;;  %v719_v22 = vlaneseq }
  0x64   : > { %2714 = vsyncadd (%p3276_p12), [#allocation9], 4294967024  ;;  %2302 = vmatprep.subr.bf16.mxu1 %v2742_v0  ;;  %2294 = vmatprep.subr.bf16.mxu0 %v2742_v0  ;;  %v2498_v2 = vld [vmem:[%s3234_s1 + $0x8] sm:$0xff]   ;;  %v2500_v4 = vld [vmem:[%s3234_s1] sm:$0xff]   ;;  %s2744_s27 = smov 104   ;;  %v2749_v42 = vmov 0  }
  0x65   : > { %2306 = vmatprep.mubr.msk.bf16.mxu1 %vm2743_vm0, %v2742_v0  ;;  %2298 = vmatprep.mubr.msk.bf16.mxu0 %vm2743_vm0, %v2742_v0  ;;  %s529_s15 = scalar_select %p528_p4, %s2850_s17, 1  ;;  %v2501_v18 = vld [vmem:[#allocation2 + $0x8] sm:$0xff]   ;;  %v2502_v19 = vld [vmem:[#allocation2] sm:$0xff]   ;;  %v2747_v20 = vmov 1983009808   ;;  %v2994_v26 = vshrl.u32 %v719_v22, 7 }
  0x66   : > { %2303 = vmatpush3.bf16.msra.mxu1 %v2497_v1  ;;  %2295 = vmatpush3.bf16.msra.mxu0 %v2498_v2  ;;  %v717_v21 = vunpack.c.l.s4 %v2747_v20  ;;  %v2748_v23 = vmov 1934713408   ;;  %vm1220_vm2 = vcmask 64512   ;;  %vm1462_vm4 = vcmask 1043456   ;;  %s2750_s28 = smov 16   ;;  %s2751_s16 = smov 8  }
  0x67   : > { %s2216_s25 = sshll.u32 %s529_s15, 3  ;;  %2304 = vmatprep.subr.bf16.mxu1 %v2742_v0  ;;  %2296 = vmatprep.subr.bf16.mxu0 %v2742_v0  ;;  %s2745_s15 = smov 120   ;;  %v734_v24 = vunpack.c.l.s4 %v2748_v23  ;;  %vm1793_vm5 = vcmask 130048   ;;  %vm1795_vm6 = vcmask 195584   ;;  %vm2003_vm7 = vcmask 523264  }
  0x68   : > { %s531_s29 = scalar_lea.vmem %s3233_s0, %s2216_s25  ;;  %s2746_s25 = smov 112   ;;  %v718_v25 = vunpack.c.0.s8 %v717_v21 }
  0x69   : > { %v2970_v5 = vld [vmem:[%s531_s29] sm:$0xff]  ;;  %v735_v27 = vunpack.c.0.s8 %v734_v24  ;;  %s2752_s20 = smov 24   ;;  %s525_s21 = sand.u32 1, %s2725_s30  }
  0x6a   : > { %v534_v6 = vpack.c.bf16 %v2970_v5, %v2970_v5  ;;  %2305 = vmatpush3.bf16.msra.mxu1 %v2499_v3  ;;  %2297 = vmatpush3.bf16.msra.mxu0 %v2500_v4  ;;  %v2997_v28 = vsub.s32 %v718_v25, %v2994_v26  ;;  %s2215_s19 = sshll.u32 %s525_s21, 3  ;;  %s2255_s18 = sshll.u32 %s2850_s17, 7 }
  0x6b   : > { %2318 = vmatprep.subr.bf16.mxu1 %v2742_v0  ;;  %2310 = vmatprep.subr.bf16.mxu0 %v2742_v0  ;;  %v3001_v32 = vsub.s32 %v735_v27, %v2994_v26  ;;  %s527_s4 = scalar_lea.vmem [#allocation11], %s2215_s19  ;;  %p3277_p8 = scmp.ne.s32.totalorder %s3263_s23, 0 }
  0x6c   : > { %s2753_s24 = smov [#allocation11]  }
  0x6d   : > { %2307 = vmatmul.mubr.msk.bf16.vlgmr.msra.gmra.mxu1 %vm551_vm1, %v534_v6  ;;  %2299 = vmatmul.mubr.msk.bf16.vlgmr.msra.gmra.mxu0 %vm551_vm1, %v534_v6  ;;  %s2665_s29 = sshll.u32 %s2753_s24, 4  ;;  %s2666_s29 = int_to_ptr.vmem [resolvable:$false] %s2665_s29 }
  0x6e   : > { %2320 = vmatprep.mubr.msk.bf16.mxu1 %vm2743_vm0, %v2742_v0  ;;  %2314 = vmatprep.mubr.msk.bf16.mxu0 %vm2743_vm0, %v2742_v0  ;;  %s2667_s17 = scalar_lea.vmem %s2666_s29, 256 }
  0x6f   : > { %2311 = vmatpush3.bf16.msra.mxu0 %v2501_v18 }
  0x70   : > { %2312 = vmatprep.subr.bf16.mxu0 %v2742_v0 }
  0x73   : > { %2313 = vmatpush3.bf16.msra.mxu0 %v2502_v19 }
  0x74   : > { %2324 = vmatprep.subr.bf16.mxu0 %v2742_v0 }
  0x76   : > { %2315 = vmatmul.mubr.msk.bf16.vlgmr.msra.gmra.mxu0 %vm551_vm1, %v534_v6 }
  0x77   : > { %2326 = vmatprep.mubr.msk.bf16.mxu0 %vm2743_vm0, %v2742_v0 }
 0x12d   : > { %v646_v7 = vpop.f32.mrf.mxu1  ;;  %v589_v9 = vpop.f32.mrf.mxu0 }
 0x12e   : > { %v877_v8 = vpack.c.bf16 %v646_v7, %v646_v7  ;;  %v595_v10 = vmul.f32 0.17677669, %v589_v9 }
 0x12f   : > { %v2308_v11 = vpop.f32.mrf.mxu1  ;;  %v2300_v12 = vpop.f32.mrf.mxu0 }
 0x130   : > { %883 = vrot.lane.b32.xlu1 %v877_v8, %s2744_s27  ;;  %879 = vrot.lane.b32.xlu0 %v877_v8, %s2745_s15  ;;  %v708_v13 = vpack.c.bf16 %v595_v10, %v595_v10  ;;  %v891_v41 = vrot.slane %v877_v8, %v2997_v28 }
 0x131   : > { %v649_v14 = vpop.f32.mrf.mxu1  ;;  %v592_v15 = vpop.f32.mrf.mxu0 }
 0x132   : > { %v722_v49 = vrot.slane %v708_v13, %v2997_v28 }
 0x133   : > { %v2309_v16 = vpop.f32.mrf.mxu1  ;;  %v2301_v17 = vpop.f32.mrf.mxu0 }
 0x134   : > { %881 = vrot.lane.b32.xlu0 %v877_v8, %s2746_s25  ;;  %710 = vrot.lane.b32.xlu1 %v708_v13, %s2745_s15 }
 0x138   : > { %712 = vrot.lane.b32.xlu0 %v708_v13, %s2746_s25  ;;  %714 = vrot.lane.b32.xlu1 %v708_v13, %s2744_s27 }
 0x1a2   : > { %v884_v29 = vpop.permute.xlu1 %883  ;;  %v880_v30 = vpop.permute.xlu0 %879 }
 0x1a3   : > { %v933_v31 = vrot.slane %v884_v29, %v2997_v28  ;;  %v925_v33 = vrot.slane %v880_v30, %v2997_v28 }
 0x1a5   : > { %v934_v34 = vcombine.low %v925_v33, %v933_v31  ;;  %v935_v35 = vcombine.high %v925_v33, %v933_v31 }
 0x1a6   : > { %v882_v36 = vpop.permute.xlu0 %881  ;;  %v711_v37 = vpop.permute.xlu1 %710 }
 0x1a7   : > { %v942_v38 = vrot.slane %v934_v34, %v3001_v32  ;;  %v949_v39 = vrot.slane %v935_v35, %v3001_v32  ;;  %v899_v40 = vrot.slane %v882_v36, %v2997_v28  ;;  %v756_v45 = vrot.slane %v711_v37, %v2997_v28 }
 0x1a9   : > { %v950_v43 = vcombine.high %v942_v38, %v2749_v42  ;;  %v951_v44 = vcombine.high %v949_v39, %v2749_v42  ;;  %v900_v46 = vcombine.low %v891_v41, %v899_v40  ;;  %v901_v47 = vcombine.high %v891_v41, %v899_v40 }
 0x1aa   : > { %v713_v48 = vpop.permute.xlu0 %712  ;;  %v715_v50 = vpop.permute.xlu1 %714  ;;  %v957_v51 = vshrl.u32 %v942_v38, 16  ;;  %v973_v52 = vshrl.u32 %v949_v39, 16 }
 0x1ab   : > { %v730_v53 = vrot.slane %v713_v48, %v2997_v28  ;;  %v764_v54 = vrot.slane %v715_v50, %v2997_v28  ;;  %v965_v55 = vshrl.u32 %v950_v43, 16  ;;  %v981_v56 = vshrl.u32 %v951_v44, 16 }
 0x1ac   : > { %v908_v57 = vrot.slane %v900_v46, %v3001_v32  ;;  %v915_v58 = vrot.slane %v901_v47, %v3001_v32 }
 0x1ad   : > { %v731_v59 = vcombine.low %v722_v49, %v730_v53  ;;  %v732_v60 = vcombine.high %v722_v49, %v730_v53  ;;  %v765_v61 = vcombine.low %v756_v45, %v764_v54  ;;  %v766_v62 = vcombine.high %v756_v45, %v764_v54 }
 0x1ae   : > { %v916_v63 = vcombine.high %v908_v57, %v2749_v42  ;;  %v917_v1 = vcombine.high %v915_v58, %v2749_v42  ;;  %v954_v2 = vpack.i.b16 %v942_v38, %v908_v57  ;;  %v956_v3 = vshrl.u32 %v908_v57, 16 }
 0x1af   : > { %v970_v4 = vpack.i.b16 %v949_v39, %v915_v58  ;;  %v972_v6 = vshrl.u32 %v915_v58, 16  ;;  %v739_v7 = vrot.slane %v731_v59, %v3001_v32  ;;  %v746_v8 = vrot.slane %v732_v60, %v3001_v32 }
 0x1b0   : > { %v958_v9 = vpack.i.b16 %v957_v51, %v956_v3  ;;  %v962_v10 = vpack.i.b16 %v950_v43, %v916_v63  ;;  %v964_v11 = vshrl.u32 %v916_v63, 16  ;;  %v978_v12 = vpack.i.b16 %v951_v44, %v917_v1 }
 0x1b1   : > { %v974_v13 = vpack.i.b16 %v973_v52, %v972_v6  ;;  %v980_v14 = vshrl.u32 %v917_v1, 16  ;;  %v984_v15 = vcombine.low %v954_v2, %v970_v4  ;;  %v747_v16 = vcombine.high %v739_v7, %v2749_v42 }
 0x1b2   : > { %v966_v17 = vpack.i.b16 %v965_v55, %v964_v11  ;;  %v992_v18 = vcombine.low %v962_v10, %v978_v12  ;;  %v748_v19 = vcombine.high %v746_v8, %v2749_v42  ;;  %v787_v24 = vshrl.u32 %v739_v7, 16 }
 0x1b3   : > { %v982_v20 = vpack.i.b16 %v981_v56, %v980_v14  ;;  %v991_v21 = vrot.slane %v984_v15, %v2997_v28  ;;  %v1009_v23 = vcombine.low %v958_v9, %v974_v13  ;;  %v795_v25 = vshrl.u32 %v747_v16, 16 }
 0x1b4   : > { %v803_v27 = vshrl.u32 %v746_v8, 16  ;;  %v773_v29 = vrot.slane %v765_v61, %v3001_v32  ;;  %v780_v30 = vrot.slane %v766_v62, %v3001_v32  ;;  %v811_v33 = vshrl.u32 %v748_v19, 16 }
 0x1b5   : > { %v1017_v31 = vcombine.low %v966_v17, %v982_v20  ;;  %v999_v34 = vrot.slane %v992_v18, %v2997_v28  ;;  %v1016_v35 = vrot.slane %v1009_v23, %v2997_v28 }
 0x1b6   : > { %v781_v36 = vcombine.high %v773_v29, %v2749_v42  ;;  %v782_v37 = vcombine.high %v780_v30, %v2749_v42  ;;  %v785_v38 = vpack.i.b16 %v773_v29, %v739_v7  ;;  %v788_v39 = vshrl.u32 %v773_v29, 16 }
 0x1b7   : > { %v801_v40 = vpack.i.b16 %v780_v30, %v746_v8  ;;  %v804_v41 = vshrl.u32 %v780_v30, 16  ;;  %v1000_v43 = vcombine.low %v991_v21, %v999_v34  ;;  %v1024_v44 = vrot.slane %v1017_v31, %v2997_v28  ;;  %v702_v34 = vpop.f32.mrf.mxu0 }
 0x1b8   : > { %v789_v45 = vpack.i.b16 %v788_v39, %v787_v24  ;;  %v793_v46 = vpack.i.b16 %v781_v36, %v747_v16  ;;  %v796_v47 = vshrl.u32 %v781_v36, 16  ;;  %v809_v48 = vpack.i.b16 %v782_v37, %v748_v19 }
 0x1b9   : > { %v805_v49 = vpack.i.b16 %v804_v41, %v803_v27  ;;  %v812_v50 = vshrl.u32 %v782_v37, 16  ;;  %v815_v51 = vcombine.low %v785_v38, %v801_v40  ;;  %v1007_v52 = vrot.slane %v1000_v43, %v3001_v32 }
 0x1ba   : > { %v797_v53 = vpack.i.b16 %v796_v47, %v795_v25  ;;  %v823_v54 = vcombine.low %v793_v46, %v809_v48  ;;  %v1025_v55 = vcombine.low %v1016_v35, %v1024_v44  ;;  %v2316_v35 = vpop.f32.mrf.mxu0  ;;  %v1218_v38 = vand.u32 127, %v719_v22 }
 0x1bb   : > { %v813_v56 = vpack.i.b16 %v812_v50, %v811_v33  ;;  %v840_v57 = vcombine.low %v789_v45, %v805_v49  ;;  %v822_v58 = vrot.slane %v815_v51, %v2997_v28  ;;  %v1037_v62 = vshrl.u32 %v1007_v52, 16 }
 0x1bc   : > { %v830_v59 = vrot.slane %v823_v54, %v2997_v28  ;;  %v1032_v60 = vrot.slane %v1025_v55, %v3001_v32  ;;  %v1008_v9 = vcombine.high %v1007_v52, %v2749_v42  ;;  %v705_v36 = vpop.f32.mrf.mxu0  ;;  %vm1219_vm3 = vcmp.ge.s32.totalorder %v2994_v26, %v1218_v38 }
 0x1bd   : > { %v848_v61 = vcombine.low %v797_v53, %v813_v56  ;;  %v847_v4 = vrot.slane %v840_v57, %v2997_v28 }
 0x1be   : > { %v831_v63 = vcombine.low %v822_v58, %v830_v59  ;;  %v1036_v1 = vpack.i.b16 %v1032_v60, %v1007_v52  ;;  %v1038_v2 = vshrl.u32 %v1032_v60, 16  ;;  %v1033_v3 = vcombine.high %v1032_v60, %v2749_v42  ;;  %v2317_v37 = vpop.f32.mrf.mxu0 }
 0x1bf   : > { %v855_v6 = vrot.slane %v848_v61, %v2997_v28  ;;  %v1043_v16 = vshrl.u32 %v1008_v9, 16 }
 0x1c0   : > { %v1225_v7 = vsel %vm1220_vm2, %v1036_v1, 0  ;;  %v1039_v8 = vpack.i.b16 %v1038_v2, %v1037_v62  ;;  %v838_v12 = vrot.slane %v831_v63, %v3001_v32  ;;  %v1044_v13 = vshrl.u32 %v1033_v3, 16 }
 0x1c1   : > { %v856_v10 = vcombine.low %v847_v4, %v855_v6  ;;  %2319 = vmatpush3.bf16.xpose.msra.mxu1 %v1225_v7  ;;  %v1042_v15 = vpack.i.b16 %v1033_v3, %v1008_v9  ;;  %v1046_v63 = vpack.c.bf16 %v702_v34, %v702_v34 }
 0x1c2   : > { %v1271_v11 = vsel %vm1220_vm2, %v1039_v8, 0  ;;  %2330 = vmatprep.subr.bf16.mxu1 %v2742_v0  ;;  %v868_v19 = vshrl.u32 %v838_v12, 16  ;;  %v1045_v20 = vpack.i.b16 %v1044_v13, %v1043_v16  ;;  %v839_v27 = vcombine.high %v838_v12, %v2749_v42 }
 0x1c3   : > { %2325 = vmatpush3.bf16.xpose.msra.mxu0 %v1271_v11  ;;  %v863_v14 = vrot.slane %v856_v10, %v3001_v32  ;;  %v1317_v21 = vsel %vm1220_vm2, %v1042_v15, 0  ;;  %v1060_v34 = vrot.slane %v1046_v63, %v2997_v28 }
 0x1c4   : > { %2336 = vmatprep.subr.bf16.mxu0 %v2742_v0  ;;  %v1363_v25 = vsel %vm1220_vm2, %v1045_v20, 0  ;;  %v874_v31 = vshrl.u32 %v839_v27, 16 }
 0x1c5   : > { %v869_v17 = vshrl.u32 %v863_v14, 16  ;;  %v867_v18 = vpack.i.b16 %v863_v14, %v838_v12  ;;  %v864_v24 = vcombine.high %v863_v14, %v2749_v42 }
 0x1c7   : > { %v870_v23 = vpack.i.b16 %v869_v17, %v868_v19  ;;  %v875_v29 = vshrl.u32 %v864_v24, 16  ;;  %v873_v30 = vpack.i.b16 %v864_v24, %v839_v27 }
 0x1c8   : > { %2321 = vmatmul.mubr.msk.bf16.vlgmr.msra.gmra.mxu1 %vm1220_vm2, %v867_v18 }
 0x1c9   : > { %2331 = vmatpush3.bf16.xpose.msra.mxu1 %v1317_v21  ;;  %2332 = vmatprep.mubr.msk.bf16.mxu1 %vm2743_vm0, %v2742_v0  ;;  %v876_v33 = vpack.i.b16 %v875_v29, %v874_v31 }
 0x1ca   : > { %2327 = vmatmul.mubr.msk.bf16.vlgmr.msra.gmra.mxu0 %vm1220_vm2, %v870_v23  ;;  %2342 = vmatprep.subr.bf16.mxu1 %v2742_v0 }
 0x1cb   : > { %2337 = vmatpush3.bf16.xpose.msra.mxu0 %v1363_v25  ;;  %2338 = vmatprep.mubr.msk.bf16.mxu0 %vm2743_vm0, %v2742_v0 }
 0x1cc   : > { %2348 = vmatprep.subr.bf16.mxu0 %v2742_v0 }
 0x1d0   : > { %2333 = vmatmul.mubr.msk.bf16.vlgmr.msra.gmra.mxu1 %vm1220_vm2, %v873_v30 }
 0x1d1   : > { %2344 = vmatprep.mubr.msk.bf16.mxu1 %vm2743_vm0, %v2742_v0 }
 0x1d2   : > { %2339 = vmatmul.mubr.msk.bf16.vlgmr.msra.gmra.mxu0 %vm1220_vm2, %v876_v33 }
 0x1d3   : > { %2350 = vmatprep.mubr.msk.bf16.mxu0 %vm2743_vm0, %v2742_v0 }
 0x288   : > { %v1261_v39 = vpop.f32.mrf.mxu1 }
 0x289   : > { %v1407_v40 = vsel %vm1219_vm3, %v1261_v39, -1e+30 }
 0x28a   : > { %v2322_v41 = vpop.f32.mrf.mxu1  ;;  %v1307_v43 = vpop.f32.mrf.mxu0  ;;  %v1411_v44 = vsel %vm1220_vm2, %v1407_v40, -inf }
 0x28b   : > { %v1408_v45 = vsel %vm1219_vm3, %v1307_v43, -1e+30  ;;  %1412 = vmax.xlane.f32.xlu0 %v1411_v44 }
 0x28c   : > { %v1264_v46 = vpop.f32.mrf.mxu1  ;;  %v2328_v47 = vpop.f32.mrf.mxu0  ;;  %v1414_v48 = vsel %vm1220_vm2, %v1408_v45, -inf }
 0x28d   : > { %1415 = vmax.xlane.f32.xlu1 %v1414_v48 }
 0x28e   : > { %v2323_v22 = vpop.f32.mrf.mxu1  ;;  %v1310_v49 = vpop.f32.mrf.mxu0 }
 0x290   : > { %v2329_v50 = vpop.f32.mrf.mxu0  ;;  %v1353_v51 = vpop.f32.mrf.mxu1 }
 0x291   : > { %v1409_v52 = vsel %vm1219_vm3, %v1353_v51, -1e+30 }
 0x292   : > { %v2334_v53 = vpop.f32.mrf.mxu1  ;;  %v1399_v54 = vpop.f32.mrf.mxu0  ;;  %v1417_v55 = vsel %vm1220_vm2, %v1409_v52, -inf }
 0x293   : > { %v1410_v56 = vsel %vm1219_vm3, %v1399_v54, -1e+30  ;;  %1418 = vmax.xlane.f32.xlu0 %v1417_v55 }
 0x294   : > { %v1356_v57 = vpop.f32.mrf.mxu1  ;;  %v2340_v58 = vpop.f32.mrf.mxu0  ;;  %v1420_v61 = vsel %vm1220_vm2, %v1410_v56, -inf }
 0x296   : > { %v2335_v59 = vpop.f32.mrf.mxu1  ;;  %v1402_v60 = vpop.f32.mrf.mxu0 }
 0x297   : > { %1421 = vmax.xlane.f32.xlu0 %v1420_v61 }
 0x298   : > { %v2341_v62 = vpop.f32.mrf.mxu0 }
 0x29e   : > { %1048 = vrot.lane.b32.xlu1 %v1046_v63, %s2745_s15 }
 0x314   : > { %v1413_v1 = vpop.xlane.xlu0 %1412 }
 0x315   : > { %v1423_v2 = vsub.f32 %v1407_v40, %v1413_v1 }
 0x316   : > { %v1416_v3 = vpop.xlane.xlu1 %1415 }
 0x317   : > { %v1427_v4 = vmul.f32 1.442695, %v1423_v2  ;;  %v1424_v6 = vsub.f32 %v1408_v45, %v1416_v3 }
 0x319   : > { %2511 = vpow2.f32 %v1427_v4  ;;  %v1429_v26 = vmul.f32 1.442695, %v1424_v6 }
 0x31a   : > { %v1049_v21 = vpop.permute.xlu1 %1048 }
 0x31b   : > { %2513 = vpow2.f32 %v1429_v26  ;;  %v1094_v27 = vrot.slane %v1049_v21, %v2997_v28 }
 0x31c   : > { %v1419_v11 = vpop.xlane.xlu0 %1418 }
 0x31d   : > { %v1425_v13 = vsub.f32 %v1409_v52, %v1419_v11 }
 0x31f   : > { %v1431_v15 = vmul.f32 1.442695, %v1425_v13 }
 0x320   : > { %v1422_v12 = vpop.xlane.xlu0 %1421 }
 0x321   : > { %v1426_v14 = vsub.f32 %v1410_v56, %v1422_v12  ;;  %2515 = vpow2.f32 %v1431_v15 }
 0x323   : > { %v1433_v16 = vmul.f32 1.442695, %v1426_v14 }
 0x325   : > { %2517 = vpow2.f32 %v1433_v16 }
 0x326   : > { %v3077_v7 = vpop.eup %2511 }
 0x327   : > { %v1435_v8 = vsel %vm1220_vm2, %v3077_v7, 0.0 }
 0x328   : > { %v3081_v9 = vpop.eup %2513  ;;  %1436 = vadd.xlane.f32.xlu1 %v1435_v8 }
 0x329   : > { %v1438_v10 = vsel %vm1220_vm2, %v3081_v9, 0.0 }
 0x32a   : > { %1439 = vadd.xlane.f32.xlu0 %v1438_v10 }
 0x32e   : > { %v3087_v17 = vpop.eup %2515 }
 0x32f   : > { %v1441_v19 = vsel %vm1220_vm2, %v3087_v17, 0.0 }
 0x332   : > { %v3089_v18 = vpop.eup %2517 }
 0x333   : > { %v1444_v20 = vsel %vm1220_vm2, %v3089_v18, 0.0 }
 0x339   : > { %1052 = vrot.lane.b32.xlu1 %v1046_v63, %s2744_s27  ;;  %s2092_s27 = sshll.u32 %s527_s4, 4  ;;  %s2093_s27 = int_to_ptr.vmem [resolvable:$true] %s2092_s27 }
 0x33a   : > { %p2668_p5 = scmp.lt.s32.totalorder %s2093_s27, %s2666_s29 }
 0x340   : > { %1050 = vrot.lane.b32.xlu0 %v1046_v63, %s2746_s25 }
 0x35d   : > { %1442 = vadd.xlane.f32.xlu1 %v1441_v19 }
 0x35f   : > { %1445 = vadd.xlane.f32.xlu0 %v1444_v20 }
 0x3b1   : > { %v1437_v23 = vpop.xlane.xlu1 %1436 }
 0x3b2   : > { %2519 = vrcp.f32 %v1437_v23 }
 0x3b3   : > { %v1440_v24 = vpop.xlane.xlu0 %1439 }
 0x3b4   : > { %2521 = vrcp.f32 %v1440_v24 }
 0x3b5   : > { %v1053_v25 = vpop.permute.xlu1 %1052 }
 0x3b6   : > { %v1102_v29 = vrot.slane %v1053_v25, %v2997_v28 }
 0x3b7   : > { %v1051_v30 = vpop.permute.xlu0 %1050 }
 0x3b8   : > { %v1103_v31 = vcombine.low %v1094_v27, %v1102_v29  ;;  %v1104_v33 = vcombine.high %v1094_v27, %v1102_v29  ;;  %v1068_v35 = vrot.slane %v1051_v30, %v2997_v28 }
 0x3ba   : > { %v1111_v36 = vrot.slane %v1103_v31, %v3001_v32  ;;  %v1118_v37 = vrot.slane %v1104_v33, %v3001_v32  ;;  %v1069_v38 = vcombine.low %v1060_v34, %v1068_v35  ;;  %v1070_v39 = vcombine.high %v1060_v34, %v1068_v35 }
 0x3bc   : > { %v1119_v40 = vcombine.high %v1111_v36, %v2749_v42  ;;  %v1077_v41 = vrot.slane %v1069_v38, %v3001_v32  ;;  %v1084_v43 = vrot.slane %v1070_v39, %v3001_v32  ;;  %v1120_v44 = vcombine.high %v1118_v37, %v2749_v42 }
 0x3bd   : > { %v1126_v45 = vshrl.u32 %v1111_v36, 16  ;;  %v1142_v50 = vshrl.u32 %v1118_v37, 16 }
 0x3be   : > { %v1085_v46 = vcombine.high %v1077_v41, %v2749_v42  ;;  %v1086_v47 = vcombine.high %v1084_v43, %v2749_v42  ;;  %v1123_v48 = vpack.i.b16 %v1111_v36, %v1077_v41  ;;  %v1125_v22 = vshrl.u32 %v1077_v41, 16 }
 0x3bf   : > { %v1134_v49 = vshrl.u32 %v1119_v40, 16  ;;  %v1139_v51 = vpack.i.b16 %v1118_v37, %v1084_v43  ;;  %v1141_v52 = vshrl.u32 %v1084_v43, 16  ;;  %v1150_v57 = vshrl.u32 %v1120_v44, 16  ;;  %v2520_v11 = vpop.eup %2519 }
 0x3c0   : > { %v1127_v53 = vpack.i.b16 %v1126_v45, %v1125_v22  ;;  %v1131_v54 = vpack.i.b16 %v1119_v40, %v1085_v46  ;;  %v1133_v55 = vshrl.u32 %v1085_v46, 16  ;;  %v1147_v56 = vpack.i.b16 %v1120_v44, %v1086_v47 }
 0x3c1   : > { %v1143_v58 = vpack.i.b16 %v1142_v50, %v1141_v52  ;;  %v1149_v59 = vshrl.u32 %v1086_v47, 16  ;;  %v1153_v60 = vcombine.low %v1123_v48, %v1139_v51  ;;  %v2522_v13 = vpop.eup %2521  ;;  %v1448_v16 = vmul.f32 %v2520_v11, %v3077_v7 }
 0x3c2   : > { %v1135_v61 = vpack.i.b16 %v1134_v49, %v1133_v55  ;;  %v1161_v62 = vcombine.low %v1131_v54, %v1147_v56  ;;  %v1450_v24 = vmul.f32 %v2522_v13, %v3081_v9 }
 0x3c3   : > { %v1151_v63 = vpack.i.b16 %v1150_v57, %v1149_v59  ;;  %v1178_v1 = vcombine.low %v1127_v53, %v1143_v58  ;;  %v1160_v2 = vrot.slane %v1153_v60, %v2997_v28  ;;  %v1455_v34 = vpack.c.bf16 %v1448_v16, %v1448_v16 }
 0x3c4   : > { %v1168_v3 = vrot.slane %v1161_v62, %v2997_v28  ;;  %v1456_v35 = vpack.c.bf16 %v1450_v24, %v1450_v24 }
 0x3c5   : > { %v1186_v4 = vcombine.low %v1135_v61, %v1151_v63  ;;  %v1185_v26 = vrot.slane %v1178_v1, %v2997_v28 }
 0x3c6   : > { %v1169_v6 = vcombine.low %v1160_v2, %v1168_v3 }
 0x3c7   : > { %v1193_v8 = vrot.slane %v1186_v4, %v2997_v28 }
 0x3c8   : > { %v1176_v10 = vrot.slane %v1169_v6, %v3001_v32 }
 0x3c9   : > { %v1194_v12 = vcombine.low %v1185_v26, %v1193_v8  ;;  %v2503_v8 = vld [vmem:[#allocation5 + $0x8] sm:$0xff]  }
 0x3ca   : > { %v1177_v14 = vcombine.high %v1176_v10, %v2749_v42  ;;  %v1206_v20 = vshrl.u32 %v1176_v10, 16 }
 0x3cb   : > { %v1201_v15 = vrot.slane %v1194_v12, %v3001_v32 }
 0x3cc   : > { %v1212_v25 = vshrl.u32 %v1177_v14, 16 }
 0x3cd   : > { %v1205_v19 = vpack.i.b16 %v1201_v15, %v1176_v10  ;;  %v1207_v21 = vshrl.u32 %v1201_v15, 16  ;;  %v1202_v23 = vcombine.high %v1201_v15, %v2749_v42 }
 0x3cf   : > { %v1464_v27 = vsel %vm1462_vm4, %v1205_v19, 0  ;;  %v1208_v29 = vpack.i.b16 %v1207_v21, %v1206_v20  ;;  %v1211_v30 = vpack.i.b16 %v1202_v23, %v1177_v14  ;;  %v1213_v31 = vshrl.u32 %v1202_v23, 16 }
 0x3d0   : > { %2343 = vmatpush3.bf16.msra.mxu1 %v1464_v27 }
 0x3d1   : > { %v1510_v33 = vsel %vm1462_vm4, %v1208_v29, 0  ;;  %2354 = vmatprep.subr.bf16.mxu1 %v2742_v0  ;;  %v1214_v7 = vpack.i.b16 %v1213_v31, %v1212_v25  ;;  %v1556_v42 = vsel %vm1462_vm4, %v1211_v30, 0  ;;  %v2504_v25 = vld [vmem:[#allocation5] sm:$0xff]  }
 0x3d2   : > { %2349 = vmatpush3.bf16.msra.mxu0 %v1510_v33 }
 0x3d3   : > { %2345 = vmatmul.mubr.msk.bf16.vlgmr.msra.gmra.mxu1 %vm1220_vm2, %v1455_v34  ;;  %2360 = vmatprep.subr.bf16.mxu0 %v2742_v0  ;;  %v1602_v9 = vsel %vm1462_vm4, %v1214_v7, 0 }
 0x3d4   : > { %2355 = vmatpush3.bf16.msra.mxu1 %v1556_v42  ;;  %2356 = vmatprep.mubr.msk.bf16.mxu1 %vm2743_vm0, %v2742_v0 }
 0x3d5   : > { %2351 = vmatmul.mubr.msk.bf16.vlgmr.msra.gmra.mxu0 %vm1220_vm2, %v1456_v35  ;;  %2366 = vmatprep.subr.bf16.mxu1 %v2742_v0 }
 0x3d6   : > { %2361 = vmatpush3.bf16.msra.mxu0 %v1602_v9  ;;  %2362 = vmatprep.mubr.msk.bf16.mxu0 %vm2743_vm0, %v2742_v0 }
 0x3d7   : > { %2374 = vmatprep.subr.bf16.mxu0 %v2742_v0 }
 0x3e6   : > { %v1443_v36 = vpop.xlane.xlu1 %1442 }
 0x3e7   : > { %2523 = vrcp.f32 %v1443_v36 }
 0x3e8   : > { %v1446_v37 = vpop.xlane.xlu0 %1445 }
 0x3e9   : > { %2525 = vrcp.f32 %v1446_v37 }
 0x3f4   : > { %v2524_v38 = vpop.eup %2523 }
 0x3f5   : > { %v1452_v39 = vmul.f32 %v2524_v38, %v3087_v17 }
 0x3f6   : > { %v2526_v40 = vpop.eup %2525 }
 0x3f7   : > { %v1457_v41 = vpack.c.bf16 %v1452_v39, %v1452_v39  ;;  %v1454_v43 = vmul.f32 %v2526_v40, %v3089_v18 }
 0x3f9   : > { %2357 = vmatmul.mubr.msk.bf16.vlgmr.msra.gmra.mxu1 %vm1220_vm2, %v1457_v41  ;;  %v1458_v44 = vpack.c.bf16 %v1454_v43, %v1454_v43 }
 0x3fa   : > { %2370 = vmatprep.mubr.msk.bf16.mxu1 %vm2743_vm0, %v2742_v0  ;;  %2367 = vmatpush3.bf16.msra.mxu1 %v2503_v8  ;;  %v2242_v8 = vld [vmem:[#allocation10] ss:$0 sm:$0xff] }
 0x3fb   : > { %2363 = vmatmul.mubr.msk.bf16.vlgmr.msra.gmra.mxu0 %vm1220_vm2, %v1458_v44  ;;  %2368 = vmatprep.subr.bf16.mxu1 %v2742_v0  ;;  %v2236_v44 = vld [vmem:[%s3238_s5] ss:$0 sm:$0xff] }
 0x3fc   : > { %2378 = vmatprep.mubr.msk.bf16.mxu0 %vm2743_vm0, %v2742_v0 }
 0x3fe   : > { %2369 = vmatpush3.bf16.msra.mxu1 %v2504_v25 }
 0x3ff   : > { %2382 = vmatprep.subr.bf16.mxu1 %v2742_v0 }
 0x493   : > { %v1500_v45 = vpop.f32.mrf.mxu1 }
 0x495   : > { %v2346_v46 = vpop.f32.mrf.mxu1  ;;  %v1546_v47 = vpop.f32.mrf.mxu0 }
 0x497   : > { %v1503_v48 = vpop.f32.mrf.mxu1  ;;  %v2352_v17 = vpop.f32.mrf.mxu0 }
 0x499   : > { %v2347_v22 = vpop.f32.mrf.mxu1  ;;  %v1549_v49 = vpop.f32.mrf.mxu0 }
 0x49b   : > { %v2353_v50 = vpop.f32.mrf.mxu0 }
 0x4b9   : > { %v1592_v18 = vpop.f32.mrf.mxu1 }
 0x4ba   : > { %v1644_v51 = vcombine.low %v1500_v45, %v1592_v18  ;;  %v1645_v52 = vcombine.high %v1500_v45, %v1592_v18 }
 0x4bb   : > { %v2358_v53 = vpop.f32.mrf.mxu1  ;;  %v1638_v54 = vpop.f32.mrf.mxu0 }
 0x4bc   : > { %v1660_v55 = vcombine.low %v1546_v47, %v1638_v54  ;;  %v1661_v56 = vcombine.high %v1546_v47, %v1638_v54  ;;  %v1652_v59 = vrot.slane %v1644_v51, %v2997_v28  ;;  %v1659_v60 = vrot.slane %v1645_v52, %v2997_v28  ;;  %v2505_v53 = vld [vmem:[#allocation8 + $0x8] sm:$0xff]   ;;  %v2506_v54 = vld [vmem:[#allocation8] sm:$0xff]  }
 0x4bd   : > { %v1595_v57 = vpop.f32.mrf.mxu1  ;;  %v2364_v58 = vpop.f32.mrf.mxu0  ;;  %2375 = vmatpush3.bf16.msra.mxu0 %v2505_v53 }
 0x4be   : > { %v1668_v61 = vrot.slane %v1660_v55, %v2997_v28  ;;  %v1675_v62 = vrot.slane %v1661_v56, %v2997_v28  ;;  %2376 = vmatprep.subr.bf16.mxu0 %v2742_v0  ;;  %v2507_v55 = vld [vmem:[%s3243_s10 + $0x18] sm:$0xff]   ;;  %v2508_v56 = vld [vmem:[%s3243_s10 + $0x10] sm:$0xff]  }
 0x4bf   : > { %v2359_v63 = vpop.f32.mrf.mxu1  ;;  %v1641_v1 = vpop.f32.mrf.mxu0 }
 0x4c0   : > { %v1676_v2 = vcombine.low %v1652_v59, %v1668_v61  ;;  %v1677_v3 = vcombine.high %v1652_v59, %v1668_v61  ;;  %v1692_v4 = vcombine.low %v1659_v60, %v1675_v62  ;;  %v1693_v6 = vcombine.high %v1659_v60, %v1675_v62  ;;  %v2240_v61 = vld [vmem:[%s3239_s6] ss:$0 sm:$0xff] }
 0x4c1   : > { %v2365_v26 = vpop.f32.mrf.mxu0  ;;  %2377 = vmatpush3.bf16.msra.mxu0 %v2506_v54  ;;  %v2241_v63 = vld [vmem:[#allocation7] ss:$0 sm:$0xff] }
 0x4c2   : > { %v1684_v10 = vrot.slane %v1676_v2, %v3001_v32  ;;  %v1691_v11 = vrot.slane %v1677_v3, %v3001_v32  ;;  %v1700_v12 = vrot.slane %v1692_v4, %v3001_v32  ;;  %v1707_v13 = vrot.slane %v1693_v6, %v3001_v32  ;;  %v2509_v6 = vld [vmem:[%s3243_s10 + $0x8] sm:$0xff]   ;;  %v2510_v26 = vld [vmem:[%s3243_s10] sm:$0xff]  }
 0x4c4   : > { %v1712_v14 = vcombine.low %v1684_v10, %v1691_v11  ;;  %v2234_v15 = vcombine.high %v1684_v10, %v1691_v11  ;;  %v1728_v16 = vcombine.low %v1700_v12, %v1707_v13  ;;  %v2235_v19 = vcombine.high %v1700_v12, %v1707_v13 }
 0x4c6   : > { %v1719_v20 = vrot.slane %v1712_v14, %v2997_v28  ;;  %v1727_v21 = vrot.slane %v2234_v15, %v2997_v28  ;;  %v1735_v23 = vrot.slane %v1728_v16, %v2997_v28  ;;  %v1743_v24 = vrot.slane %v2235_v19, %v2997_v28  ;;  %v2246_v16 = vld [vmem:[%s3244_s11] ss:$0 sm:$0xff] }
 0x4c8   : > { %v1745_v27 = vcombine.high %v1719_v20, %v1727_v21  ;;  %v1761_v29 = vcombine.high %v1735_v23, %v1743_v24  ;;  %v1744_v30 = vcombine.low %v1719_v20, %v1727_v21  ;;  %v1760_v31 = vcombine.low %v1735_v23, %v1743_v24 }
 0x4ca   : > { %v1759_v33 = vrot.slane %v1745_v27, %v3001_v32  ;;  %v1775_v34 = vrot.slane %v1761_v29, %v3001_v32  ;;  %v1752_v7 = vrot.slane %v1744_v30, %v3001_v32  ;;  %v1768_v42 = vrot.slane %v1760_v31, %v3001_v32 }
 0x4cc   : > { %v1778_v35 = vcombine.low %v1759_v33, %v1775_v34  ;;  %v1777_v9 = vcombine.high %v1752_v7, %v1768_v42  ;;  %v1776_v36 = vcombine.low %v1752_v7, %v1768_v42  ;;  %v1779_v28 = vcombine.high %v1759_v33, %v1775_v34 }
 0x4ce   : > { %1785 = vrot.lane.b32.xlu1 %v1778_v35, %s2750_s28  ;;  %1781 = vrot.lane.b32.xlu0 %v1777_v9, %s2751_s16  ;;  %v2252_v35 = vld [vmem:[%s3245_s12] ss:$0 sm:$0xff]  ;;  %s2090_s28 = scalar_lea.hbm %s3247_s14, %s2255_s18  ;;  %s2079_s16 = scalar_lea.sflag [#allocation4], %s525_s21 }
 0x4d2   : > { %1789 = vrot.lane.b32.xlu1 %v1779_v28, %s2752_s20  ;;  %s2661_s20 = scalar_lea.vmem %s2093_s27, 128 }
 0x4d3   : > { %p2662_p7 = scmp.ne.s32.totalorder %s2093_s27, %s2661_s20  ;;  %p2669_p6 = scmp.lt.s32.totalorder %s2667_s17, %s2661_s20 }
 0x4d5   : > { %p2663_p9 = pnand %p2662_p7, %p3277_p8  ;;  %p2670_p0 = por %p2669_p6, %p2668_p5 }
 0x4d7   : > { %p2664_p11 = pneg %p2663_p9 }
 0x4d9   : > { %p2671_p1 = pnand %p2670_p0, %p2664_p11 }
 0x540   : > { %v1786_v37 = vpop.permute.xlu1 %1785  ;;  %v1782_v38 = vpop.permute.xlu0 %1781 }
 0x541   : > { %v1792_v39 = vsel %vm1220_vm2, %v1776_v36, %v1782_v38  ;;  %v2253_v36 = vld [vmem:[%s3246_s13] ss:$0 sm:$0xff] }
 0x542   : > { %v1794_v41 = vsel %vm1793_vm5, %v1792_v39, %v1786_v37 }
 0x544   : > { %v1790_v40 = vpop.permute.xlu1 %1789 }
 0x545   : > { %v1796_v43 = vsel %vm1795_vm6, %v1794_v41, %v1790_v40 }
 0x546   : > { %v1797_v32 = vpack.c.bf16 %v1796_v43, %v1796_v43 }
 0x548   : > { %2371 = vmatmul.mubr.msk.bf16.vlgmr.msra.gmra.mxu1 %vm551_vm1, %v1797_v32 }
 0x549   : > { %2390 = vmatprep.mubr.msk.bf16.mxu1 %vm2743_vm0, %v2742_v0  ;;  %2383 = vmatpush3.bf16.msra.mxu1 %v2507_v55 }
 0x54a   : > { %2384 = vmatprep.subr.bf16.mxu1 %v2742_v0 }
 0x54d   : > { %2385 = vmatpush3.bf16.msra.mxu1 %v2508_v56 }
 0x54e   : > { %2386 = vmatprep.subr.bf16.mxu1 %v2742_v0 }
 0x551   : > { %2387 = vmatpush3.bf16.msra.mxu1 %v2509_v6 }
 0x552   : > { %2388 = vmatprep.subr.bf16.mxu1 %v2742_v0 }
 0x555   : > { %2389 = vmatpush3.bf16.msra.mxu1 %v2510_v26 }
 0x608   : > { %v1858_v45 = vpop.f32.mrf.mxu1 }
 0x609   : > { %v1859_v46 = vadd.f32 %v2236_v44, %v1858_v45 }
 0x60a   : > { %v2372_v47 = vpop.f32.mrf.mxu1 }
 0x60b   : > { %v1866_v48 = vsel %vm551_vm1, %v1859_v46, 0.0 }
 0x60c   : > { %1867 = vadd.xlane.f32.xlu0 %v1866_v48  ;;  %v1861_v17 = vpop.f32.mrf.mxu1 }
 0x60e   : > { %v2373_v22 = vpop.f32.mrf.mxu1 }
 0x695   : > { %v1868_v49 = vpop.xlane.xlu0 %1867 }
 0x696   : > { %v1870_v50 = vmul.f32 0.03125, %v1868_v49 }
 0x698   : > { %v1871_v18 = vsub.f32 %v1859_v46, %v1870_v50 }
 0x69a   : > { %v1872_v51 = vmul.f32 %v1871_v18, %v1871_v18 }
 0x69c   : > { %v1873_v52 = vsel %vm551_vm1, %v1872_v51, 0.0 }
 0x69d   : > { %1874 = vadd.xlane.f32.xlu1 %v1873_v52 }
 0x726   : > { %v1875_v57 = vpop.xlane.xlu1 %1874 }
 0x727   : > { %v1876_v58 = vmul.f32 0.03125, %v1875_v57 }
 0x729   : > { %v1877_v59 = vadd.f32 1e-05, %v1876_v58 }
 0x72b   : > { %2527 = vrsqrt.f32 %v1877_v59 }
 0x738   : > { %v2528_v60 = vpop.eup %2527 }
 0x739   : > { %v1879_v62 = vmul.f32 %v2528_v60, %v1871_v18 }
 0x73b   : > { %v1886_v1 = vmul.f32 %v2240_v61, %v1879_v62 }
 0x73d   : > { %v1893_v2 = vadd.f32 %v2241_v63, %v1886_v1 }
 0x73f   : > { %v1894_v3 = vadd.f32 %v1893_v2, %v2970_v5 }
 0x741   : > { %v1895_v4 = vpack.c.bf16 %v1894_v3, %v1894_v3 }
 0x743   : > { %2379 = vmatmul.mubr.msk.bf16.vlgmr.msra.gmra.mxu0 %vm551_vm1, %v1895_v4 }
 0x803   : > { %v1956_v10 = vpop.f32.mrf.mxu0 }
 0x804   : > { %v1957_v11 = vadd.f32 %v2242_v8, %v1956_v10 }
 0x805   : > { %v2380_v12 = vpop.f32.mrf.mxu0 }
 0x806   : > { %v1962_v5 = vmax.f32 %v1957_v11, 0.0 }
 0x807   : > { %v1959_v13 = vpop.f32.mrf.mxu0 }
 0x808   : > { %v1963_v14 = vpack.c.bf16 %v1962_v5, %v1962_v5 }
 0x809   : > { %v2381_v15 = vpop.f32.mrf.mxu0 }
 0x80a   : > { %2391 = vmatmul.mubr.msk.bf16.vlgmr.msra.gmra.mxu1 %vm2003_vm7, %v1963_v14 }
 0x8ca   : > { %v2041_v0 = vpop.f32.mrf.mxu1 }
 0x8cb   : > { %v2042_v19 = vadd.f32 %v2246_v16, %v2041_v0 }
 0x8cc   : > { %v2392_v20 = vpop.f32.mrf.mxu1 }
 0x8cd   : > { %v2049_v21 = vsel %vm551_vm1, %v2042_v19, 0.0 }
 0x8ce   : > { %2050 = vadd.xlane.f32.xlu0 %v2049_v21  ;;  %v2044_v23 = vpop.f32.mrf.mxu1 }
 0x8d0   : > { %v2393_v24 = vpop.f32.mrf.mxu1 }
 0x957   : > { %v2051_v25 = vpop.xlane.xlu0 %2050 }
 0x958   : > { %v2052_v27 = vmul.f32 0.03125, %v2051_v25 }
 0x95a   : > { %v2053_v29 = vsub.f32 %v2042_v19, %v2052_v27 }
 0x95c   : > { %v2054_v30 = vmul.f32 %v2053_v29, %v2053_v29 }
 0x95e   : > { %v2055_v31 = vsel %vm551_vm1, %v2054_v30, 0.0 }
 0x95f   : > { %2056 = vadd.xlane.f32.xlu0 %v2055_v31 }
 0x9e8   : > { %v2057_v33 = vpop.xlane.xlu0 %2056 }
 0x9e9   : > { %v2058_v34 = vmul.f32 0.03125, %v2057_v33 }
 0x9eb   : > { %v2059_v7 = vadd.f32 1e-05, %v2058_v34 }
 0x9ed   : > { %2529 = vrsqrt.f32 %v2059_v7 }
 0x9fa   : > { %v2530_v42 = vpop.eup %2529 }
 0x9fb   : > { %v2061_v9 = vmul.f32 %v2530_v42, %v2053_v29 }
 0x9fd   : > { %v2068_v28 = vmul.f32 %v2252_v35, %v2061_v9 }
 0x9ff   : > { %v2075_v37 = vadd.f32 %v2253_v36, %v2068_v28 }
 0xa01   : > { %v2076_v38 = vadd.f32 %v2075_v37, %v1894_v3 }
 0xa03   : > { %2077 = vst.msk [vmem:[%s527_s4] sm:$0xff] %vm551_vm1, %v2076_v38 }
 0xa04   : > { %2674 = shalt.err (!%p2671_p1)
}
 0xa05   : > { %s2675_s19 = scalar_lea.hbm %s2090_s28, 128  ;;  %s2679_s26 = scalar_lea.hbm %s3247_s14, 256 }
 0xa06   : > { %p2676_p13 = scmp.ne.s32.totalorder %s2090_s28, %s2675_s19  ;;  %p2680_p2 = scmp.lt.s32.totalorder %s2090_s28, %s3247_s14 }
 0xa07   : > { %p2681_p12 = scmp.lt.s32.totalorder %s2679_s26, %s2675_s19 }
 0xa08   : > { %p2677_p10 = pnand %p2676_p13, %p3277_p8 }
 0xa09   : > { %p2682_p4 = por %p2681_p12, %p2680_p2 }
 0xa0a   : > { %p2678_p3 = pneg %p2677_p10 }
 0xa0c   : > { %p2683_p7 = pnand %p2682_p4, %p2678_p3 }
 0xa0e   : > { %2686 = shalt.err (!%p2683_p7)
}
 0xa0f   : > { %2414 = dma.vmem_to_hbm [thread:$0]  (%p3277_p8), %s2093_s27, 128, %s2090_s28, %s2079_s16  }
 0xa10 PF: > { %s3278_s15 = sld [smem:[#allocation18_spill]] }
 0xa11   : > { %s3279_s25 = sld [smem:[#allocation16_spill]] }
 0xa12   : > { %s3280_s20 = sld [smem:[#allocation21_spill]] }
 0xa16   : > { %p2446_p9 = scmp.ge.s32.totalorder %s3278_s15, 2 }
 0xa17   : > { %s2104_s24 = sand.u32 1, %s3279_s25  }
 0xa18   : > { %p3281_p11 = scmp.ne.s32.totalorder %s3280_s20, 0  ;;  %s2105_s29 = scalar_lea.sflag [#allocation4], %s2104_s24 }
 0xa1a   : > { %p2433_p5 = pnand %p2446_p9, %p3281_p11 }
 0xa1c   : > { %p2434_p6 = pneg %p2433_p5 }
 0xa1e   : > { %2716 = dma.done.wait (%p2434_p6), %s2105_s29, 128  }
 0xa1f   : > { %2718 = vsyncadd (%p2434_p6), %s2105_s29, 4294967168  ;;  %s3282_s16 = sld [smem:[#allocation19_spill]]  ;;  %s3285_s29 = smov %s2725_s30 }
 0xa20   : > { %s3283_s17 = sld [smem:[#allocation17_spill]] }
 0xa21   : > { %s3284_s15 = sld [smem:[#allocation20_spill]] }
 0xa25   : > { %p27_p0 = scmp.ge.s32.totalorder %s3282_s16, 4  }
 0xa26   : > { %s3286_s30 = smov %s3283_s17 }
 0xa27   :  { %29 = sbr.rel (!%p27_p0) target bundleno = 8 (0x8), region = 132 }
 0xa2c   :  { %2110 = vsyncpa [#allocation3], 1 }
 0xa2d   :  { %2112 = vsyncpa [#allocation3 + $0x1], 1 }
 0xa2e   :  { %2113 = vsyncpa [#allocation6], 1 }
 0xa2f   :  { %2114 = vsyncpa [#allocation9], 1 }
 0xa30   :  { %2115 = vsyncpa [#allocation4], 1 }
 0xa31   :  { %2117 = vsyncpa [#allocation4 + $0x1], 1 }

</bundles_post_ra>
